<compile_context>
chip_gen: v6e
topology: v6e:2x2x1
jax: 0.10.0
libtpu: 0.0.40
codegen_flags: <defaults>
</compile_context>

<pallas_src>
import jax
import jax.numpy as jnp
from jax.experimental import pallas as pl
from jax.experimental.pallas import tpu as pltpu

C, H, W = 80, 8, 8
K = C * H * W            # 5120 (flattened conv output)
N = 1858                 # policy-map output size
TK = 1024                # K-tile: 5120 = 5 * 1024  (one column group per K-tile)
TN = 384                 # N-tile (3*128): lane aligned, fits ~372-col groups


def make_policy_rows():
    """Deterministic synthetic stand-in for Maia's make_map() index vector.

    The real policy map is a (5120, 1858) {0,1} matrix with exactly one 1 per
    column; column n selects flattened conv-output row rows[n].  We reproduce
    that structure deterministically (no checkpoint load).
    """
    # TODO(synk): real Leela policy-map indices not reproduced; synthetic 1-hot columns.
    return [(n * 7919) % K for n in range(N)]


def rows_to_dense_map(rows):
    """Dense (K, N) {0,1} policy map -- used only for the reference check."""
    rows = jnp.asarray(rows, dtype=jnp.int32)
    cols = jnp.arange(N, dtype=jnp.int32)
    return jnp.zeros((K, N), dtype=jnp.float32).at[rows, cols].set(1.0)


def build_schedule(rows, tk=TK, tn=TN):
    """Model-setup-time prep (hoisted out of the hot path).

    Groups output columns by their source K-tile, pads each group to a multiple
    of TN (sentinel -1 => all-zero column), pads the N-tile count to an even
    number (v7x megacore balance), and returns:
      kt_ids     : int32 [num_n_tiles]      k-tile id per N tile (scalar prefetch)
      local_rows : int32 [1, n_total]       row index LOCAL to that k-tile, or -1
      inv_perm   : int32 [N]                padded slot of original column n
    """
    ng = K // tk
    groups = [[] for _ in range(ng)]
    for n, r in enumerate(rows):
        groups[r // tk].append(n)

    kt_ids, local_rows, perm_cols = [], [], []
    for g, cols in enumerate(groups):
        if not cols:
            continue
        padded = ((len(cols) + tn - 1) // tn) * tn
        for j in range(padded):
            if j < len(cols):
                n = cols[j]
                perm_cols.append(n)
                local_rows.append(rows[n] - g * tk)
            else:
                perm_cols.append(-1)
                local_rows.append(-1)          # matches no k in [0, tk)
        kt_ids.extend([g] * (padded // tn))

    # Even N-tile count -> "parallel" axis splits evenly across v7x's two TCs.
    if len(kt_ids) % 2 == 1:
        kt_ids.append(0)
        local_rows.extend([-1] * tn)
        perm_cols.extend([-1] * tn)

    n_total = len(local_rows)
    inv = [0] * N
    for slot, n in enumerate(perm_cols):
        if n >= 0:
            inv[n] = slot

    return (jnp.asarray(kt_ids, dtype=jnp.int32),
            jnp.asarray(local_rows, dtype=jnp.int32).reshape(1, n_total),
            jnp.asarray(inv, dtype=jnp.int32))


def _policy_map_kernel(kt_ref, lrows_ref, x_ref, o_ref):
    # One grid step = one N tile whose columns all come from a single K tile
    # (that K tile of x was selected by the data-dependent index_map, so kt_ref
    # is not needed in the body).  No accumulation / zero-init required.
    lrows = lrows_ref[...]                                    # (1, TN) int32, local
    kk = jax.lax.broadcasted_iota(jnp.int32, (TK, TN), 0)     # (TK, TN) int32
    onehot = (kk == lrows).astype(jnp.bfloat16)               # exact {0,1} in bf16
    o_ref[...] = jnp.dot(x_ref[...].astype(jnp.bfloat16), onehot,
                         preferred_element_type=jnp.float32)


def apply_policy_map(x, schedule):
    """x: [B, 80, 8, 8] float32 (NCHW) -> [B, 1858] float32."""
    kt_ids, local_rows, inv_perm = schedule
    B = x.shape[0]
    x_flat = x.reshape(B, K)          # same as torch.reshape (row-major flatten)
    n_total = local_rows.shape[1]
    num_tiles = n_total // TN

    cost = pl.CostEstimate(
        flops=2 * B * K * N,
        transcendentals=0,
        bytes_accessed=4 * (B * K + B * n_total) + 4 * (n_total + num_tiles),
    )

    out_pad = pl.pallas_call(
        _policy_map_kernel,
        out_shape=jax.ShapeDtypeStruct((B, n_total), jnp.float32),
        grid_spec=pltpu.PrefetchScalarGridSpec(
            num_scalar_prefetch=1,               # kt_ids -> SMEM, feeds index_maps
            grid=(num_tiles,),                   # 1-D grid over N tiles only
            in_specs=[
                pl.BlockSpec((1, TN), lambda n, kt: (0, n)),      # local row idx
                pl.BlockSpec((B, TK), lambda n, kt: (0, kt[n])),  # x's single K tile
            ],
            out_specs=pl.BlockSpec((B, TN), lambda n, kt: (0, n)),
        ),
        compiler_params=pltpu.CompilerParams(
            dimension_semantics=("parallel",),   # independent N tiles (v7x megacore)
        ),
        cost_estimate=cost,
    )(kt_ids, local_rows, x_flat)

    # Un-permute the tiny [B, n_total] result back to original column order.
    return out_pad[:, inv_perm]


if __name__ == "__main__":
    key = jax.random.PRNGKey(0)
    B = 2
    x = jax.random.normal(key, (B, C, H, W), dtype=jnp.float32)

    rows = make_policy_rows()
    schedule = build_schedule(rows)           # model-setup time, not per call

    out = apply_policy_map(x, schedule)
    out = jax.block_until_ready(out)

    # Correctness: the kernel selects bf16-rounded activations via an exact
    # {0,1} one-hot; compare against the dense-matmul reference on the same
    # bf16-rounded x (accumulation has a single nonzero term -> exact).
    fc1 = rows_to_dense_map(rows)
    x_bf = x.astype(jnp.bfloat16).astype(jnp.float32)
    ref = x_bf.reshape(B, K) @ fc1
    assert out.shape == (B, N)
    assert jnp.allclose(out, ref, atol=1e-3, rtol=1e-3)

    print("KERNEL_OK")
</pallas_src>

<mosaic_0001>
module attributes {stable_mosaic.version = 11 : i64} {
  func.func @_policy_map_kernel(%arg0: i32, %arg1: memref<6xi32, #tpu.memory_space<smem>>, %arg2: memref<1x384xi32, #tpu.memory_space<vmem>>, %arg3: memref<2x1024xf32, #tpu.memory_space<vmem>>, %arg4: memref<2x384xf32, #tpu.memory_space<vmem>>) attributes {dimension_semantics = [#tpu.dimension_semantics<parallel>], iteration_bounds = array<i64: 6>, scalar_prefetch = 1 : i64, scratch_operands = 0 : i64, tpu.core_type = #tpu.core_type<tc>, window_params = [{transform_indices = @transform_0, window_bounds = array<i64: 1, 384>}, {transform_indices = @transform_1, window_bounds = array<i64: 2, 1024>}, {transform_indices = @transform_2, window_bounds = array<i64: 2, 384>}]} {
    %c0 = arith.constant 0 : index
    %c0_0 = arith.constant 0 : index
    %0 = vector.load %arg2[%c0, %c0_0] : memref<1x384xi32, #tpu.memory_space<vmem>>, vector<1x384xi32>
    %1 = tpu.iota {dimensions = array<i32: 0>} : vector<1024x384xi32>
    %2 = vector.broadcast %0 : vector<1x384xi32> to vector<1024x384xi32>
    %3 = arith.cmpi eq, %1, %2 : vector<1024x384xi32>
    %4 = arith.extui %3 : vector<1024x384xi1> to vector<1024x384xi32>
    %5 = arith.sitofp %4 : vector<1024x384xi32> to vector<1024x384xf32>
    %6 = arith.truncf %5 : vector<1024x384xf32> to vector<1024x384xbf16>
    %c0_1 = arith.constant 0 : index
    %c0_2 = arith.constant 0 : index
    %7 = vector.load %arg3[%c0_1, %c0_2] : memref<2x1024xf32, #tpu.memory_space<vmem>>, vector<2x1024xf32>
    %8 = arith.truncf %7 : vector<2x1024xf32> to vector<2x1024xbf16>
    %cst = arith.constant dense<0.000000e+00> : vector<2x384xf32>
    %9 = tpu.matmul %8, %6, %cst {dimension_numbers = #tpu.dot_dimension_numbers<[1], [0], [0], [1], [0, 0, 1, 1], [], []>} : vector<2x1024xbf16>, vector<1024x384xbf16>, vector<2x384xf32> -> vector<2x384xf32>
    %c0_3 = arith.constant 0 : index
    %c0_4 = arith.constant 0 : index
    %10 = vector.load %arg4[%c0_3, %c0_4] : memref<2x384xf32, #tpu.memory_space<vmem>>, vector<2x384xf32>
    tpu.vector_store %arg4[%c0_3, %c0_4], %9 {strides = array<i32>} : memref<2x384xf32, #tpu.memory_space<vmem>>, vector<2x384xf32>,
    return
  }
  func.func @transform_0(%arg0: i32, %arg1: memref<6xi32, #tpu.memory_space<smem>>) -> (i32, i32) {
    %c0_i32 = arith.constant 0 : i32
    %c0_i32_0 = arith.constant 0 : i32
    return %c0_i32, %arg0 : i32, i32
  }
  func.func @transform_1(%arg0: i32, %arg1: memref<6xi32, #tpu.memory_space<smem>>) -> (i32, i32) {
    %0 = arith.index_cast %arg0 : i32 to index
    %1 = memref.load %arg1[%0] : memref<6xi32, #tpu.memory_space<smem>>
    %c0_i32 = arith.constant 0 : i32
    %c0_i32_0 = arith.constant 0 : i32
    return %c0_i32, %1 : i32, i32
  }
  func.func @transform_2(%arg0: i32, %arg1: memref<6xi32, #tpu.memory_space<smem>>) -> (i32, i32) {
    %c0_i32 = arith.constant 0 : i32
    %c0_i32_0 = arith.constant 0 : i32
    return %c0_i32, %arg0 : i32, i32
  }
}

</mosaic_0001>

<bundles_post_ra>
// kernel: tpu_custom_call.1
= control target key start
LH: loop header
LB: loop body
LE: loop exit
PB: predicated region body
PF: predicated region fallthrough
CT: control target
= control target key end

     0   :  { %s3322_s12 = smov [#allocation3]   ;;  %s5659_s0 = inlined_call_operand.hbm [shape: s32[6], index: 0, kind: input, shape index: {}]   ;;  %s5660_s1 = inlined_call_operand.hbm [shape: s32[1,2304], index: 1, kind: input, shape index: {}]   ;;  %s5661_s2 = inlined_call_operand.hbm [shape: f32[2,5120], index: 2, kind: input, shape index: {}]   ;;  %s5662_s3 = inlined_call_operand.hbm [shape: f32[2,2304], index: 3, kind: output, shape index: {}]  }
   0x1   :  { %5756 = sst [smem:[#allocation99_spill]] %s5660_s1 }
   0x2   :  { %9 = dma.hbm_to_smem %s5659_s0, 16, %s3322_s12, [#allocation2] }
   0x3   :  { %3280 = dma.done.wait [#allocation2], 16 }
   0x4   :  { %3281 = vsyncadd [#allocation2], 4294967280 }
   0x5   :  { %11 = sfence }
   0x6   :  { %12 = vsyncpa [#allocation5], 0 }
   0x7   :  { %14 = vsyncpa [#allocation5 + $0x1], 0 }
   0x8   :  { %15 = vsyncpa [#allocation8], 0 }
   0x9   :  { %17 = vsyncpa [#allocation8 + $0x1], 0 }
   0xa   :  { %18 = vsyncpa [#allocation6], 0 }
   0xb   :  { %20 = vsyncpa [#allocation6 + $0x1], 0  ;;  %s3351_s15 = smov 0   ;;  %s3353_s16 = smov 0  }
   0xc   :  { %s3355_s17 = smov 0   ;;  %s3357_s18 = smov 0  }
   0xd   :  { %s3359_s19 = smov 0   ;;  %s3361_s0 = smov 0  }
   0xe   :  { %s3363_s20 = smov 0  }
   0xf LB: > { %5757 = sst [smem:[#allocation16_spill]] %s3316_s0  ;;  %s3387_s21 = sadd.s32 4294967295, %s3320_s20   ;;  %s3320_s20 = sphi %s3363_s20, %s6030_s20   ;;  %s3316_s0 = sphi %s3361_s0, %s6024_s0   ;;  %s3312_s19 = sphi %s3359_s19, %s6029_s19   ;;  %s3308_s18 = sphi %s3357_s18, %s6028_s18   ;;  %s3304_s17 = sphi %s3355_s17, %s6027_s17   ;;  %s3300_s16 = sphi %s3353_s16, %s6026_s16   ;;  %s3296_s15 = sphi %s3351_s15, %s6025_s15  }
  0x10   : > { %s2204_s22 = sadd.s32 4294967294, %s3320_s20   ;;  %s3391_s23 = sadd.s32 1, %s3320_s20  }
  0x11   : > { %s33_s24 = sadd.s32 1, %s3316_s0  ;;  %s30_s25 = ssub.s32 %s3320_s20, %s3391_s23 }
  0x12   : > { %p40_p0 = scmp.ne.s32.totalorder %s3316_s0, %s3312_s19  ;;  %p31_p1 = scmp.eq.s32.totalorder %s30_s25, 0 }
  0x13   : > { %p5664_p2 = scmp.eq.s32.totalorder %s3320_s20, 0  ;;  %p46_p3 = scmp.ne.s32.totalorder %s3312_s19, %s3308_s18 }
  0x14   : > { %p5665_p4 = scmp.eq.s32.totalorder %s3387_s21, 0  ;;  %s3414_s28 = sld [smem:[#allocation3 + %s3391_s23]] }
  0x15   : > { %s3403_s26 = scalar_select %p31_p1, %s3316_s0, %s33_s24  }
  0x16   : > { %p42_p5 = por %p5664_p2, %p40_p0  ;;  %p3409_p6 = por %p5665_p4, %p46_p3 }
  0x17   : > { %5758 = sst [smem:[#allocation17_spill]] %s3403_s26  ;;  %p98_p7 = scmp.eq.s32.totalorder %s3387_s21, 5 }
  0x18   : > { %s5759_s27 = scalar_select %p3409_p6, 1, 0 }
  0x19   : > { %p104_p8 = scmp.eq.s32.totalorder %s2204_s22, 5  ;;  %p3417_p9 = por %p98_p7, %p40_p0 }
  0x1a   : > { %p5663_p10 = scmp.lt.s32.totalorder %s3320_s20, 6  ;;  %s124_s4 = sand.u32 1, %s3316_s0  }
  0x1b   : > { %s5760_s29 = scalar_select %p3417_p9, 1, 0 }
  0x1c   : > { %p3422_p11 = por %p104_p8, %p46_p3  ;;  %s3075_s5 = smul.u32 3, %s124_s4 }
  0x1d   : > { %s2984_s6 = smul.u32 48, %s3320_s20  ;;  %p3430_p12 = pnand %p5663_p10, %p42_p5 }
  0x1e   : > { %s5761_s30 = scalar_select %p3422_p11, 1, 0 }
  0x1f   : > { %s5763_s1 = sld [smem:[#allocation99_spill]]  ;;  %s128_s11 = scalar_lea.vmem [#allocation4], %s3075_s5 }
  0x20   : > { %s136_s12 = sshll.u32 %s128_s11, 4  ;;  %s125_s13 = scalar_lea.sflag [#allocation5], %s124_s4  ;;  %s137_s12 = int_to_ptr.vmem [resolvable:$true] %s136_s12 }
  0x21   : > { %p3172_p1 = pneg %p3430_p12 }
  0x25   : > { %s3438_s10 = scalar_lea.hbm %s5763_s1, %s2984_s6  ;;  %s3175_s25 = scalar_lea.hbm %s5763_s1, 288 }
  0x26   : > { %s3170_s14 = scalar_lea.hbm %s3438_s10, 48  ;;  %p3176_p7 = scmp.lt.s32.totalorder %s3438_s10, %s5763_s1 }
  0x27   : > { %p3171_p0 = scmp.ne.s32.totalorder %s3438_s10, %s3170_s14  ;;  %p3177_p8 = scmp.lt.s32.totalorder %s3175_s25, %s3170_s14 }
  0x29   : > { %p3173_p3 = pnand %p3172_p1, %p3171_p0  ;;  %p3178_p10 = por %p3177_p8, %p3176_p7 }
  0x2b   : > { %p3174_p5 = pneg %p3173_p3 }
  0x2d   : > { %p3179_p2 = pnand %p3178_p10, %p3174_p5 }
  0x2f   : > { %3182 = shalt.err (!%p3179_p2)
}
  0x30   : > { %s3183_s5 = scalar_lea.vmem %s137_s12, 48  ;;  %s3323_s4 = smov [#allocation4]  }
  0x31   : > { %p3184_p4 = scmp.ne.s32.totalorder %s137_s12, %s3183_s5  ;;  %s3188_s9 = sshll.u32 %s3323_s4, 4  ;;  %s3189_s9 = int_to_ptr.vmem [resolvable:$false] %s3188_s9 }
  0x32   : > { %s3190_s11 = scalar_lea.vmem %s3189_s9, 96  ;;  %p3191_p0 = scmp.lt.s32.totalorder %s137_s12, %s3189_s9 }
  0x33   : > { %p3186_p13 = pnand %p3184_p4, %p3172_p1  ;;  %p3192_p3 = scmp.lt.s32.totalorder %s3190_s11, %s3183_s5 }
  0x35   : > { %p3187_p11 = pneg %p3186_p13  ;;  %p3193_p9 = por %p3192_p3, %p3191_p0 }
  0x37   : > { %p3194_p6 = pnand %p3193_p9, %p3187_p11 }
  0x39   : > { %3197 = shalt.err (!%p3194_p6)
}
  0x3a   : > { %3089 = dma.hbm_to_vmem [thread:$0]  (!%p3430_p12), %s3438_s10, 48, %s137_s12, %s125_s13  }
  0x3b   : > { %p161_p2 = scmp.lt.s32.totalorder %s3320_s20, 7  ;;  %p5764_p4 = scmp.ge.s32.totalorder %s3320_s20, 1 }
  0x3c   : > { %s56_s14 = sld [smem:[#allocation3 + %s3320_s20]]  ;;  %p68_p9 = scmp.ne.s32.totalorder %s3304_s17, %s3300_s16 }
  0x3d   : > { %p3457_p6 = pnand %p5764_p4, %p161_p2  ;;  %p74_p10 = scmp.ne.s32.totalorder %s3300_s16, %s3296_s15 }
  0x3e   : > { %p5766_p11 = scmp.eq.s32.totalorder %s3387_s21, 0  ;;  %s143_s24 = sand.u32 1, %s3304_s17  }
  0x3f   : > { %s5765_s7 = scalar_select %p3457_p6, 1, 0 }
  0x40   : > { %p3468_p13 = por %p74_p10, %p5766_p11  ;;  %p5768_p1 = scmp.eq.s32.totalorder %s3320_s20, 0 }
  0x41   : > { %s61_s10 = sadd.s32 1, %s3304_s17  ;;  %s2208_s13 = sshll.u32 %s143_s24, 4 }
  0x42   : > { %s5767_s22 = scalar_select %p3468_p13, 1, 0 }
  0x43   : > { %p70_p12 = por %p68_p9, %p5768_p1  ;;  %s58_s12 = ssub.s32 %s56_s14, %s3414_s28 }
  0x44   : > { %p59_p5 = scmp.eq.s32.totalorder %s58_s12, 0  ;;  %p5769_p7 = scmp.lt.s32.totalorder %s3320_s20, 6 }
  0x45   : > { %s3079_s8 = scalar_select %p70_p12, [#allocation3], [#allocation10] }
  0x46   : > { %p3479_p8 = pnand %p5769_p7, %p70_p12  ;;  %p5771_p0 = pmov %p5769_p7 }
  0x47   : > { %s3484_s15 = scalar_select %p59_p5, %s3304_s17, %s61_s10  }
  0x48   : > { %s3080_s6 = scalar_select %p70_p12, %s3320_s20, 0 }
  0x49   : > { %s6032_s8 = smov (!%p5771_p0, %s3079_s8), [#allocation11]  ;;  %p5772_p3 = pmov %p5771_p0 }
  0x4a   : > { %s147_s4 = scalar_lea.vmem [#allocation7], %s2208_s13  ;;  %s144_s1 = scalar_lea.sflag [#allocation8], %s143_s24 }
  0x4b   : > { %s6034_s6 = smov (!%p5772_p3, %s3080_s6), 0  ;;  %s156_s9 = sshll.u32 %s147_s4, 4  ;;  %s3491_s9 = int_to_ptr.vmem [resolvable:$true] %s156_s9 }
  0x4c   : > { %s148_s5 = sld [smem:[%s6032_s8 + %s6034_s6]]  ;;  %p3200_p4 = pneg %p3479_p8 }
  0x4d   : > { %s3203_s8 = scalar_lea.hbm %s5661_s2, 1280 }
  0x52   : > { %s2985_s28 = sshll.u32 %s148_s5, 8 }
  0x53   : > { %s154_s12 = scalar_lea.hbm %s5661_s2, %s2985_s28 }
  0x54   : > { %s3198_s26 = scalar_lea.hbm %s154_s12, 256  ;;  %p3204_p11 = scmp.lt.s32.totalorder %s154_s12, %s5661_s2 }
  0x55   : > { %p3199_p2 = scmp.ne.s32.totalorder %s154_s12, %s3198_s26  ;;  %p3205_p1 = scmp.lt.s32.totalorder %s3203_s8, %s3198_s26 }
  0x57   : > { %p3201_p9 = pnand %p3200_p4, %p3199_p2  ;;  %p3206_p12 = por %p3205_p1, %p3204_p11 }
  0x59   : > { %p3202_p10 = pneg %p3201_p9 }
  0x5b   : > { %p3207_p5 = pnand %p3206_p12, %p3202_p10 }
  0x5d   : > { %3210 = shalt.err (!%p3207_p5)
}
  0x5e   : > { %s3211_s24 = scalar_lea.vmem %s3491_s9, 256  ;;  %s3324_s5 = smov [#allocation7]  }
  0x5f   : > { %p3212_p7 = scmp.ne.s32.totalorder %s3491_s9, %s3211_s24  ;;  %s3216_s4 = sshll.u32 %s3324_s5, 4  ;;  %s3217_s4 = int_to_ptr.vmem [resolvable:$false] %s3216_s4 }
  0x60   : > { %s3218_s0 = scalar_lea.vmem %s3217_s4, 512  ;;  %p3219_p2 = scmp.lt.s32.totalorder %s3491_s9, %s3217_s4 }
  0x61   : > { %p3214_p0 = pnand %p3212_p7, %p3200_p4  ;;  %p3220_p9 = scmp.lt.s32.totalorder %s3218_s0, %s3211_s24 }
  0x63   : > { %p3215_p3 = pneg %p3214_p0  ;;  %p3221_p13 = por %p3220_p9, %p3219_p2 }
  0x65   : > { %p3222_p6 = pnand %p3221_p13, %p3215_p3 }
  0x67   : > { %3225 = shalt.err (!%p3222_p6)
}
  0x68   : > { %3094 = dma.hbm_to_vmem [thread:$0]  (!%p3479_p8), %s154_s12, 256, %s3491_s9, %s144_s1  }
  0x69   : > { %p5773_p10 = scmp.ne.s32.totalorder %s5765_s7, 0 }
  0x6b   : > { %165 = sbr.rel (%p5773_p10) target bundleno = 543 (0x21f), region = 28 }
  0x70   : > { %s3513_s26 = sand.u32 1, %s3312_s19   ;;  %p5774_p4 = scmp.ne.s32.totalorder %s5759_s27, 0 }
  0x71   : > { %s3076_s28 = smul.u32 3, %s3513_s26  ;;  %s168_s11 = scalar_lea.sflag [#allocation5], %s3513_s26 }
  0x73   : > { %s171_s14 = scalar_lea.vmem [#allocation4], %s3076_s28 }
  0x74   : > { %3283 = dma.done.wait (%p5774_p4), %s168_s11, 48  }
  0x75   : > { %3285 = vsyncadd (%p5774_p4), %s168_s11, 4294967248  ;;  %s176_s1 = sand.u32 1, %s3300_s16   ;;  %p5775_p6 = scmp.ne.s32.totalorder %s5767_s22, 0 }
  0x76   : > { %s3522_s25 = sshll.u32 %s176_s1, 4  ;;  %s177_s7 = scalar_lea.sflag [#allocation8], %s176_s1 }
  0x77   : > { %s180_s9 = scalar_lea.vmem [#allocation7], %s3522_s25 }
  0x78   : > { %3287 = dma.done.wait (%p5775_p6), %s177_s7, 256  }
  0x79   : > { %3289 = vsyncadd (%p5775_p6), %s177_s7, 4294967040  ;;  %v212_v0 = vlaneseq  ;;  %v3545_v8 = vld [vmem:[%s171_s14] sm:$0x7]  ;;  %v5717_v15 = vmov 1.0|1.0   ;;  %v1697_v58 = vld [vmem:[%s180_s9] sm:$0xff] }
  0x7a   : > { %v3326_v47 = vmov 1983009808   ;;  %s3077_s27 = smul.u32 6, %s3513_s26  ;;  %s2097_s24 = scalar_lea.sflag [#allocation6], %s3513_s26 }
  0x7b   : > { %v3529_v1 = vshrl.u32 %v212_v0, 7  ;;  %v1703_v48 = vunpack.c.l.s4 %v3326_v47  ;;  %s2986_s22 = smul.u32 96, %s3387_s21  ;;  %p6020_p8 = scmp.ne.s32.totalorder %s5760_s29, 0 }
  0x7c   : > { %s205_s12 = scalar_lea.vmem [#allocation9], %s3077_s27  ;;  %s3327_s21 = smov [#allocation9]  }
  0x7d   : > { %v343_v2 = vsub.s32 0, %v3529_v1  ;;  %v347_v3 = vsub.s32 1, %v3529_v1  ;;  %v3534_v4 = vadd.s32 112, %v3529_v1  ;;  %v3537_v5 = vadd.s32 120, %v3529_v1  ;;  %s2111_s10 = sshll.u32 %s205_s12, 4  ;;  %s2109_s6 = scalar_lea.hbm %s5662_s3, %s2986_s22  ;;  %s2112_s10 = int_to_ptr.vmem [resolvable:$true] %s2111_s10 }
  0x7e   : > { %v3540_v6 = vadd.s32 368, %v3529_v1  ;;  %v3543_v7 = vadd.s32 376, %v3529_v1  ;;  %v3554_v11 = vadd.s32 96, %v3529_v1  ;;  %v3557_v12 = vadd.s32 104, %v3529_v1  ;;  %s3226_s5 = scalar_lea.vmem %s2112_s10, 96  ;;  %s3230_s4 = sshll.u32 %s3327_s21, 4  ;;  %s3231_s4 = int_to_ptr.vmem [resolvable:$false] %s3230_s4 }
  0x7f   : > { %5776 = vst [vmem:[#allocation18_spill] sm:$0xff] %v3537_v5  ;;  %v3548_v9 = vrot.slane %v3545_v8, %v343_v2  ;;  %v3551_v10 = vrot.slane %v3545_v8, %v347_v3  ;;  %v3560_v13 = vadd.s32 352, %v3529_v1  ;;  %v3563_v14 = vadd.s32 360, %v3529_v1  ;;  %p3227_p13 = scmp.ne.s32.totalorder %s2112_s10, %s3226_s5  ;;  %s3232_s0 = scalar_lea.vmem %s3231_s4, 192 }
  0x80   : > { %5777 = vst [vmem:[#allocation19_spill] sm:$0xff] %v3540_v6  ;;  %5778 = vst [vmem:[#allocation20_spill] sm:$0xff] %v3543_v7  ;;  %v3587_v16 = vadd.s32 80, %v3529_v1  ;;  %v3590_v17 = vadd.s32 88, %v3529_v1  ;;  %v3598_v18 = vadd.s32 336, %v3529_v1  ;;  %v3601_v19 = vadd.s32 344, %v3529_v1  ;;  %p3233_p12 = scmp.lt.s32.totalorder %s2112_s10, %s3231_s4  ;;  %p3234_p5 = scmp.lt.s32.totalorder %s3232_s0, %s3226_s5 }
  0x81   : > { %5779 = vst [vmem:[#allocation21_spill] sm:$0xff] %v3554_v11  ;;  %5780 = vst [vmem:[#allocation22_spill] sm:$0xff] %v3557_v12  ;;  %vm396_vm0 = vcmp.eq.s32.totalorder %v3534_v4, %v3551_v10  ;;  %vm399_vm1 = vcmp.eq.s32.totalorder %v3537_v5, %v3551_v10  ;;  %vm492_vm2 = vcmp.eq.s32.totalorder %v3540_v6, %v3551_v10  ;;  %v3628_v20 = vadd.s32 64, %v3529_v1  ;;  %p3228_p11 = pnand %p3227_p13, %p6020_p8 }
  0x82   : > { %5781 = vst [vmem:[#allocation23_spill] sm:$0xff] %v3560_v13  ;;  %5782 = vst [vmem:[#allocation24_spill] sm:$0xff] %v3563_v14  ;;  %vm495_vm3 = vcmp.eq.s32.totalorder %v3543_v7, %v3551_v10  ;;  %vm395_vm5 = vcmp.eq.s32.totalorder %v3534_v4, %v3548_v9  ;;  %vm398_vm6 = vcmp.eq.s32.totalorder %v3537_v5, %v3548_v9  ;;  %v3631_v21 = vadd.s32 72, %v3529_v1  ;;  %p3235_p7 = por %p3234_p5, %p3233_p12 }
  0x83   : > { %vm2597_vm4 = vmpackc.low %vm399_vm1, %vm396_vm0  ;;  %vm491_vm7 = vcmp.eq.s32.totalorder %v3540_v6, %v3548_v9  ;;  %vm494_vm8 = vcmp.eq.s32.totalorder %v3543_v7, %v3548_v9  ;;  %vm390_vm10 = vcmp.eq.s32.totalorder %v3554_v11, %v3551_v10  ;;  %vm393_vm11 = vcmp.eq.s32.totalorder %v3557_v12, %v3551_v10  ;;  %5783 = vst [vmem:[#allocation25_spill] sm:$0xff] %v3587_v16  ;;  %p3229_p1 = pneg %p3228_p11 }
  0x84   : > { %2598 = vmatprep.subr.msk.bf16.mxu0 %vm2597_vm4, %v5717_v15  ;;  %vm2661_vm9 = vmpackc.low %vm495_vm3, %vm492_vm2  ;;  %5784 = vst [vmem:[#allocation26_spill] sm:$0xff] %v3590_v17  ;;  %vm486_vm13 = vcmp.eq.s32.totalorder %v3560_v13, %v3551_v10  ;;  %vm489_vm14 = vcmp.eq.s32.totalorder %v3563_v14, %v3551_v10  ;;  %vm389_vm0 = vcmp.eq.s32.totalorder %v3554_v11, %v3548_v9  ;;  %v3639_v22 = vadd.s32 320, %v3529_v1 }
  0x85   : > { %2662 = vmatprep.subr.msk.bf16.mxu1 %vm2661_vm9, %v5717_v15  ;;  %vm2599_vm12 = vmpackc.low %vm398_vm6, %vm395_vm5  ;;  %5785 = vst [vmem:[#allocation27_spill] sm:$0xff] %v3598_v18  ;;  %vm392_vm1 = vcmp.eq.s32.totalorder %v3557_v12, %v3548_v9  ;;  %vm485_vm3 = vcmp.eq.s32.totalorder %v3560_v13, %v3548_v9  ;;  %vm488_vm4 = vcmp.eq.s32.totalorder %v3563_v14, %v3548_v9  ;;  %v3642_v23 = vadd.s32 328, %v3529_v1  ;;  %p3236_p0 = pnand %p3235_p7, %p3229_p1 }
  0x86   : > { %5786 = vst [vmem:[#allocation28_spill] sm:$0xff] %v3601_v19  ;;  %2600 = vmatpush1.bf16.msk.msra.mxu0 %vm2599_vm12, %v5717_v15  ;;  %vm2663_vm15 = vmpackc.low %vm494_vm8, %vm491_vm7  ;;  %vm384_vm6 = vcmp.eq.s32.totalorder %v3587_v16, %v3551_v10  ;;  %vm387_vm7 = vcmp.eq.s32.totalorder %v3590_v17, %v3551_v10  ;;  %vm480_vm9 = vcmp.eq.s32.totalorder %v3598_v18, %v3551_v10  ;;  %v3666_v24 = vadd.s32 48, %v3529_v1 }
  0x87   : > { %2664 = vmatpush1.bf16.msk.msra.mxu1 %vm2663_vm15, %v5717_v15  ;;  %vm2601_vm2 = vmpackc.low %vm393_vm11, %vm390_vm10  ;;  %5787 = vst [vmem:[#allocation29_spill] sm:$0xff] %v3628_v20  ;;  %vm483_vm10 = vcmp.eq.s32.totalorder %v3601_v19, %v3551_v10  ;;  %vm383_vm12 = vcmp.eq.s32.totalorder %v3587_v16, %v3548_v9  ;;  %vm479_vm15 = vcmp.eq.s32.totalorder %v3598_v18, %v3548_v9  ;;  %v3669_v25 = vadd.s32 56, %v3529_v1 }
  0x88   : > { %2602 = vmatprep.subr.msk.bf16.mxu0 %vm2601_vm2, %v5717_v15  ;;  %vm2665_vm5 = vmpackc.low %vm489_vm14, %vm486_vm13  ;;  %5788 = vst [vmem:[#allocation30_spill] sm:$0xff] %v3631_v21  ;;  %vm386_vm13 = vcmp.eq.s32.totalorder %v3590_v17, %v3548_v9  ;;  %vm378_vm2 = vcmp.eq.s32.totalorder %v3628_v20, %v3551_v10  ;;  %v3677_v26 = vadd.s32 304, %v3529_v1  ;;  %v3680_v27 = vadd.s32 312, %v3529_v1 }
  0x89   : > { %2666 = vmatprep.subr.msk.bf16.mxu1 %vm2665_vm5, %v5717_v15  ;;  %vm2603_vm8 = vmpackc.low %vm392_vm1, %vm389_vm0  ;;  %5789 = vst [vmem:[#allocation31_spill] sm:$0xff] %v3639_v22  ;;  %vm482_vm0 = vcmp.eq.s32.totalorder %v3601_v19, %v3548_v9  ;;  %vm474_vm5 = vcmp.eq.s32.totalorder %v3639_v22, %v3551_v10  ;;  %v3704_v28 = vadd.s32 32, %v3529_v1  ;;  %v3707_v29 = vadd.s32 40, %v3529_v1 }
  0x8a   : > { %5790 = vst [vmem:[#allocation32_spill] sm:$0xff] %v3642_v23  ;;  %2604 = vmatpush1.bf16.msk.msra.mxu0 %vm2603_vm8, %v5717_v15  ;;  %vm2667_vm11 = vmpackc.low %vm488_vm4, %vm485_vm3  ;;  %vm381_vm3 = vcmp.eq.s32.totalorder %v3631_v21, %v3551_v10  ;;  %vm377_vm8 = vcmp.eq.s32.totalorder %v3628_v20, %v3548_v9  ;;  %v3715_v30 = vadd.s32 288, %v3529_v1  ;;  %v3718_v31 = vadd.s32 296, %v3529_v1 }
  0x8b   : > { %2668 = vmatpush1.bf16.msk.msra.mxu1 %vm2667_vm11, %v5717_v15  ;;  %vm2605_vm14 = vmpackc.low %vm387_vm7, %vm384_vm6  ;;  %5791 = vst [vmem:[#allocation33_spill] sm:$0xff] %v3666_v24  ;;  %vm477_vm6 = vcmp.eq.s32.totalorder %v3642_v23, %v3551_v10  ;;  %vm473_vm11 = vcmp.eq.s32.totalorder %v3639_v22, %v3548_v9  ;;  %v3742_v32 = vadd.s32 16, %v3529_v1  ;;  %v3745_v33 = vadd.s32 24, %v3529_v1 }
  0x8c   : > { %2606 = vmatprep.subr.msk.bf16.mxu0 %vm2605_vm14, %v5717_v15  ;;  %vm2669_vm1 = vmpackc.low %vm483_vm10, %vm480_vm9  ;;  %5792 = vst [vmem:[#allocation34_spill] sm:$0xff] %v3669_v25  ;;  %vm380_vm9 = vcmp.eq.s32.totalorder %v3631_v21, %v3548_v9  ;;  %vm372_vm14 = vcmp.eq.s32.totalorder %v3666_v24, %v3551_v10  ;;  %v3753_v34 = vadd.s32 272, %v3529_v1  ;;  %v3756_v35 = vadd.s32 280, %v3529_v1 }
  0x8d   : > { %2670 = vmatprep.subr.msk.bf16.mxu1 %vm2669_vm1, %v5717_v15  ;;  %vm2607_vm4 = vmpackc.low %vm386_vm13, %vm383_vm12  ;;  %5793 = vst [vmem:[#allocation35_spill] sm:$0xff] %v3677_v26  ;;  %vm476_vm12 = vcmp.eq.s32.totalorder %v3642_v23, %v3548_v9  ;;  %vm468_vm1 = vcmp.eq.s32.totalorder %v3677_v26, %v3551_v10  ;;  %v3780_v36 = vadd.s32 8, %v3529_v1  ;;  %v3788_v37 = vadd.s32 256, %v3529_v1 }
  0x8e   : > { %5794 = vst [vmem:[#allocation36_spill] sm:$0xff] %v3680_v27  ;;  %2608 = vmatpush1.bf16.msk.msra.mxu0 %vm2607_vm4, %v5717_v15  ;;  %vm2671_vm7 = vmpackc.low %vm482_vm0, %vm479_vm15  ;;  %vm375_vm15 = vcmp.eq.s32.totalorder %v3669_v25, %v3551_v10  ;;  %vm371_vm4 = vcmp.eq.s32.totalorder %v3666_v24, %v3548_v9  ;;  %v3791_v38 = vadd.s32 264, %v3529_v1  ;;  %v3809_v39 = vadd.s32 240, %v3529_v1 }
  0x8f   : > { %2672 = vmatpush1.bf16.msk.msra.mxu1 %vm2671_vm7, %v5717_v15  ;;  %vm2609_vm10 = vmpackc.low %vm381_vm3, %vm378_vm2  ;;  %5795 = vst [vmem:[#allocation37_spill] sm:$0xff] %v3704_v28  ;;  %vm471_vm2 = vcmp.eq.s32.totalorder %v3680_v27, %v3551_v10  ;;  %vm467_vm7 = vcmp.eq.s32.totalorder %v3677_v26, %v3548_v9  ;;  %v3812_v40 = vadd.s32 248, %v3529_v1  ;;  %v3820_v41 = vadd.s32 496, %v3529_v1 }
  0x90   : > { %2610 = vmatprep.subr.msk.bf16.mxu0 %vm2609_vm10, %v5717_v15  ;;  %vm2673_vm13 = vmpackc.low %vm477_vm6, %vm474_vm5  ;;  %5796 = vst [vmem:[#allocation38_spill] sm:$0xff] %v3707_v29  ;;  %vm374_vm5 = vcmp.eq.s32.totalorder %v3669_v25, %v3548_v9  ;;  %vm366_vm10 = vcmp.eq.s32.totalorder %v3704_v28, %v3551_v10  ;;  %v3823_v42 = vadd.s32 504, %v3529_v1  ;;  %v3847_v43 = vadd.s32 224, %v3529_v1 }
  0x91   : > { %2674 = vmatprep.subr.msk.bf16.mxu1 %vm2673_vm13, %v5717_v15  ;;  %vm2611_vm0 = vmpackc.low %vm380_vm9, %vm377_vm8  ;;  %5797 = vst [vmem:[#allocation39_spill] sm:$0xff] %v3715_v30  ;;  %vm470_vm8 = vcmp.eq.s32.totalorder %v3680_v27, %v3548_v9  ;;  %vm462_vm13 = vcmp.eq.s32.totalorder %v3715_v30, %v3551_v10  ;;  %v3850_v44 = vadd.s32 232, %v3529_v1  ;;  %v3858_v45 = vadd.s32 480, %v3529_v1 }
  0x92   : > { %5798 = vst [vmem:[#allocation40_spill] sm:$0xff] %v3718_v31  ;;  %2612 = vmatpush1.bf16.msk.msra.mxu0 %vm2611_vm0, %v5717_v15  ;;  %vm2675_vm3 = vmpackc.low %vm476_vm12, %vm473_vm11  ;;  %vm369_vm11 = vcmp.eq.s32.totalorder %v3707_v29, %v3551_v10  ;;  %vm365_vm0 = vcmp.eq.s32.totalorder %v3704_v28, %v3548_v9  ;;  %v3861_v46 = vadd.s32 488, %v3529_v1  ;;  %v3888_v49 = vadd.s32 208, %v3529_v1 }
  0x93   : > { %2676 = vmatpush1.bf16.msk.msra.mxu1 %vm2675_vm3, %v5717_v15  ;;  %vm2613_vm6 = vmpackc.low %vm375_vm15, %vm372_vm14  ;;  %5799 = vst [vmem:[#allocation41_spill] sm:$0xff] %v3742_v32  ;;  %vm465_vm14 = vcmp.eq.s32.totalorder %v3718_v31, %v3551_v10  ;;  %vm461_vm3 = vcmp.eq.s32.totalorder %v3715_v30, %v3548_v9  ;;  %v3891_v50 = vadd.s32 216, %v3529_v1  ;;  %v3902_v51 = vadd.s32 464, %v3529_v1 }
  0x94   : > { %2614 = vmatprep.subr.msk.bf16.mxu0 %vm2613_vm6, %v5717_v15  ;;  %vm2677_vm9 = vmpackc.low %vm471_vm2, %vm468_vm1  ;;  %5800 = vst [vmem:[#allocation42_spill] sm:$0xff] %v3745_v33  ;;  %vm368_vm1 = vcmp.eq.s32.totalorder %v3707_v29, %v3548_v9  ;;  %vm360_vm6 = vcmp.eq.s32.totalorder %v3742_v32, %v3551_v10  ;;  %v3905_v52 = vadd.s32 472, %v3529_v1  ;;  %v3927_v53 = vadd.s32 192, %v3529_v1 }
  0x95   : > { %2678 = vmatprep.subr.msk.bf16.mxu1 %vm2677_vm9, %v5717_v15  ;;  %vm2615_vm12 = vmpackc.low %vm374_vm5, %vm371_vm4  ;;  %5801 = vst [vmem:[#allocation43_spill] sm:$0xff] %v3753_v34  ;;  %vm464_vm4 = vcmp.eq.s32.totalorder %v3718_v31, %v3548_v9  ;;  %vm456_vm9 = vcmp.eq.s32.totalorder %v3753_v34, %v3551_v10  ;;  %v1704_v54 = vunpack.c.0.s8 %v1703_v48  ;;  %v3938_v55 = vadd.s32 200, %v3529_v1 }
  0x96   : > { %5802 = vst [vmem:[#allocation44_spill] sm:$0xff] %v3756_v35  ;;  %2616 = vmatpush1.bf16.msk.msra.mxu0 %vm2615_vm12, %v5717_v15  ;;  %vm2679_vm15 = vmpackc.low %vm470_vm8, %vm467_vm7  ;;  %vm363_vm7 = vcmp.eq.s32.totalorder %v3745_v33, %v3551_v10  ;;  %vm359_vm12 = vcmp.eq.s32.totalorder %v3742_v32, %v3548_v9  ;;  %v3946_v56 = vadd.s32 448, %v3529_v1  ;;  %v3949_v57 = vadd.s32 456, %v3529_v1 }
  0x97   : > { %2680 = vmatpush1.bf16.msk.msra.mxu1 %vm2679_vm15, %v5717_v15  ;;  %vm2617_vm2 = vmpackc.low %vm369_vm11, %vm366_vm10  ;;  %5803 = vst [vmem:[#allocation45_spill] sm:$0xff] %v3780_v36  ;;  %vm459_vm10 = vcmp.eq.s32.totalorder %v3756_v35, %v3551_v10  ;;  %vm455_vm15 = vcmp.eq.s32.totalorder %v3753_v34, %v3548_v9  ;;  %v3978_v59 = vadd.s32 176, %v3529_v1  ;;  %v3981_v60 = vsub.s32 %v1704_v54, %v3529_v1 }
  0x98   : > { %2618 = vmatprep.subr.msk.bf16.mxu0 %vm2617_vm2, %v5717_v15  ;;  %vm2681_vm5 = vmpackc.low %vm465_vm14, %vm462_vm13  ;;  %5804 = vst [vmem:[#allocation46_spill] sm:$0xff] %v3788_v37  ;;  %vm362_vm13 = vcmp.eq.s32.totalorder %v3745_v33, %v3548_v9  ;;  %vm354_vm2 = vcmp.eq.s32.totalorder %v3529_v1, %v3551_v10  ;;  %v3993_v61 = vadd.s32 184, %v3529_v1  ;;  %v3996_v62 = vadd.s32 432, %v3529_v1 }
  0x99   : > { %2682 = vmatprep.subr.msk.bf16.mxu1 %vm2681_vm5, %v5717_v15  ;;  %vm2619_vm8 = vmpackc.low %vm368_vm1, %vm365_vm0  ;;  %5805 = vst [vmem:[#allocation47_spill] sm:$0xff] %v3791_v38  ;;  %vm458_vm0 = vcmp.eq.s32.totalorder %v3756_v35, %v3548_v9  ;;  %vm450_vm5 = vcmp.eq.s32.totalorder %v3788_v37, %v3551_v10  ;;  %v3999_v63 = vadd.s32 440, %v3529_v1  ;;  %v4013_v0 = vrot.slane %v1697_v58, %v3981_v60 }
  0x9a   : > { %2620 = vmatpush1.bf16.msk.msra.mxu0 %vm2619_vm8, %v5717_v15  ;;  %vm2683_vm11 = vmpackc.low %vm464_vm4, %vm461_vm3  ;;  %vm357_vm3 = vcmp.eq.s32.totalorder %v3780_v36, %v3551_v10  ;;  %vm353_vm8 = vcmp.eq.s32.totalorder %v3529_v1, %v3548_v9  ;;  %5806 = vst [vmem:[#allocation48_spill] sm:$0xff] %v3847_v43  ;;  %v1701_v2 = vcombine.high %v1697_v58, %v1697_v58  ;;  %v4040_v3 = vadd.s32 160, %v3529_v1 }
  0x9b   : > { %2684 = vmatpush1.bf16.msk.msra.mxu1 %vm2683_vm11, %v5717_v15  ;;  %vm2621_vm14 = vmpackc.low %vm363_vm7, %vm360_vm6  ;;  %vm453_vm6 = vcmp.eq.s32.totalorder %v3791_v38, %v3551_v10  ;;  %vm449_vm11 = vcmp.eq.s32.totalorder %v3788_v37, %v3548_v9  ;;  %5807 = vst [vmem:[#allocation49_spill] sm:$0xff] %v3850_v44  ;;  %v1716_v47 = vcombine.high %v4013_v0, %v4013_v0  ;;  %v4061_v54 = vadd.s32 168, %v3529_v1 }
  0x9c   : > { %2622 = vmatprep.subr.msk.bf16.mxu0 %vm2621_vm14, %v5717_v15  ;;  %vm2685_vm1 = vmpackc.low %vm459_vm10, %vm456_vm9  ;;  %vm356_vm9 = vcmp.eq.s32.totalorder %v3780_v36, %v3548_v9  ;;  %vm444_vm14 = vcmp.eq.s32.totalorder %v3809_v39, %v3551_v10  ;;  %5808 = vst [vmem:[#allocation50_spill] sm:$0xff] %v3858_v45  ;;  %v4045_v48 = vrot.slane %v1701_v2, %v3981_v60  ;;  %v4071_v58 = vadd.s32 416, %v3529_v1 }
  0x9d   : > { %2686 = vmatprep.subr.msk.bf16.mxu1 %vm2685_vm1, %v5717_v15  ;;  %vm2623_vm4 = vmpackc.low %vm362_vm13, %vm359_vm12  ;;  %vm452_vm12 = vcmp.eq.s32.totalorder %v3791_v38, %v3548_v9  ;;  %vm540_vm1 = vcmp.eq.s32.totalorder %v3820_v41, %v3551_v10  ;;  %5809 = vst [vmem:[#allocation51_spill] sm:$0xff] %v3861_v46  ;;  %v4074_v2 = vadd.s32 424, %v3529_v1  ;;  %v4076_v38 = vpack.c.bf16 %v1716_v47, %v1716_v47 }
  0x9e   : > { %2624 = vmatpush1.bf16.msk.msra.mxu0 %vm2623_vm4, %v5717_v15  ;;  %vm2687_vm7 = vmpackc.low %vm458_vm0, %vm455_vm15  ;;  %vm447_vm15 = vcmp.eq.s32.totalorder %v3812_v40, %v3551_v10  ;;  %vm443_vm4 = vcmp.eq.s32.totalorder %v3809_v39, %v3548_v9  ;;  %5810 = vst [vmem:[#allocation52_spill] sm:$0xff] %v3888_v49  ;;  %v1717_v37 = vcombine.high %v4045_v48, %v4045_v48  ;;  %v4117_v36 = vadd.s32 144, %v3529_v1 }
  0x9f   : > { %2688 = vmatpush1.bf16.msk.msra.mxu1 %vm2687_vm7, %v5717_v15  ;;  %vm2625_vm10 = vmpackc.low %vm357_vm3, %vm354_vm2  ;;  %vm543_vm2 = vcmp.eq.s32.totalorder %v3823_v42, %v3551_v10  ;;  %vm539_vm7 = vcmp.eq.s32.totalorder %v3820_v41, %v3548_v9  ;;  %5811 = vst [vmem:[#allocation53_spill] sm:$0xff] %v3891_v50  ;;  %1783 = vmatprep.mubr.bf16.mxu0 %v4076_v38  ;;  %v4131_v35 = vadd.s32 400, %v3529_v1  ;;  %v4134_v34 = vadd.s32 408, %v3529_v1 }
  0xa0   : > { %2626 = vmatprep.subr.msk.bf16.mxu0 %vm2625_vm10, %v5717_v15  ;;  %vm2689_vm13 = vmpackc.low %vm453_vm6, %vm450_vm5  ;;  %vm446_vm5 = vcmp.eq.s32.totalorder %v3812_v40, %v3548_v9  ;;  %vm438_vm10 = vcmp.eq.s32.totalorder %v3847_v43, %v3551_v10  ;;  %5812 = vst [vmem:[#allocation54_spill] sm:$0xff] %v3902_v51  ;;  %v4103_v47 = vpack.c.bf16 %v1717_v37, %v1717_v37  ;;  %v4120_v37 = vadd.s32 152, %v3529_v1 }
  0xa1   : > { %2690 = vmatprep.subr.msk.bf16.mxu1 %vm2689_vm13, %v5717_v15  ;;  %vm2627_vm0 = vmpackc.low %vm356_vm9, %vm353_vm8  ;;  %vm542_vm8 = vcmp.eq.s32.totalorder %v3823_v42, %v3548_v9  ;;  %vm534_vm13 = vcmp.eq.s32.totalorder %v3858_v45, %v3551_v10  ;;  %5813 = vst [vmem:[#allocation55_spill] sm:$0xff] %v3905_v52  ;;  %v4165_v33 = vadd.s32 128, %v3529_v1  ;;  %v4168_v32 = vadd.s32 136, %v3529_v1 }
  0xa2   : > { %2628 = vmatpush1.bf16.msk.msra.mxu0 %vm2627_vm0, %v5717_v15  ;;  %vm2691_vm3 = vmpackc.low %vm452_vm12, %vm449_vm11  ;;  %vm441_vm11 = vcmp.eq.s32.totalorder %v3850_v44, %v3551_v10  ;;  %vm437_vm0 = vcmp.eq.s32.totalorder %v3847_v43, %v3548_v9  ;;  %5814 = vst [vmem:[#allocation56_spill] sm:$0xff] %v3927_v53  ;;  %1824 = vmatprep.mubr.bf16.mxu1 %v4103_v47  ;;  %v4176_v31 = vadd.s32 384, %v3529_v1  ;;  %v4179_v30 = vadd.s32 392, %v3529_v1 }
  0xa3   : > { %2692 = vmatpush1.bf16.msk.msra.mxu1 %vm2691_vm3, %v5717_v15  ;;  %vm2629_vm6 = vmpackc.low %vm447_vm15, %vm444_vm14  ;;  %vm537_vm14 = vcmp.eq.s32.totalorder %v3861_v46, %v3551_v10  ;;  %vm533_vm3 = vcmp.eq.s32.totalorder %v3858_v45, %v3548_v9  ;;  %5815 = vst [vmem:[#allocation57_spill] sm:$0xff] %v3938_v55  ;;  %v4217_v29 = vadd.s32 888, %v3529_v1  ;;  %v4259_v28 = vadd.s32 872, %v3529_v1 }
  0xa4   : > { %2630 = vmatprep.subr.msk.bf16.mxu0 %vm2629_vm6, %v5717_v15  ;;  %vm2693_vm9 = vmpackc.low %vm543_vm2, %vm540_vm1  ;;  %vm440_vm1 = vcmp.eq.s32.totalorder %v3850_v44, %v3548_v9  ;;  %vm432_vm6 = vcmp.eq.s32.totalorder %v3888_v49, %v3551_v10  ;;  %5816 = vst [vmem:[#allocation58_spill] sm:$0xff] %v3946_v56  ;;  %v4454_v27 = vadd.s32 528, %v3529_v1  ;;  %v4463_v26 = vadd.s32 536, %v3529_v1 }
  0xa5   : > { %2694 = vmatprep.subr.msk.bf16.mxu1 %vm2693_vm9, %v5717_v15  ;;  %vm2631_vm12 = vmpackc.low %vm446_vm5, %vm443_vm4  ;;  %vm536_vm4 = vcmp.eq.s32.totalorder %v3861_v46, %v3548_v9  ;;  %vm528_vm9 = vcmp.eq.s32.totalorder %v3902_v51, %v3551_v10  ;;  %5817 = vst [vmem:[#allocation59_spill] sm:$0xff] %v3949_v57  ;;  %v4466_v25 = vadd.s32 784, %v3529_v1  ;;  %v4469_v24 = vadd.s32 792, %v3529_v1 }
  0xa6   : > { %2632 = vmatpush2.bf16.msk.msra.mxu0 %vm2631_vm12, %v5717_v15  ;;  %vm2695_vm15 = vmpackc.low %vm542_vm8, %vm539_vm7  ;;  %vm435_vm7 = vcmp.eq.s32.totalorder %v3891_v50, %v3551_v10  ;;  %vm431_vm12 = vcmp.eq.s32.totalorder %v3888_v49, %v3548_v9  ;;  %5818 = vst [vmem:[#allocation60_spill] sm:$0xff] %v3978_v59  ;;  %v4562_v23 = vadd.s32 760, %v3529_v1  ;;  %v4565_v22 = vadd.s32 1008, %v3529_v1 }
  0xa7   : > { %2696 = vmatpush2.bf16.msk.msra.mxu1 %vm2695_vm15, %v5717_v15  ;;  %vm2633_vm2 = vmpackc.low %vm441_vm11, %vm438_vm10  ;;  %vm531_vm10 = vcmp.eq.s32.totalorder %v3905_v52, %v3551_v10  ;;  %5819 = vst [vmem:[#allocation61_spill] sm:$0xff] %v3981_v60  ;;  %v4568_v21 = vadd.s32 1016, %v3529_v1  ;;  %v4597_v20 = vadd.s32 736, %v3529_v1  ;;  %v4676_v17 = vadd.s32 728, %v3529_v1 }
  0xa8   : > { %2634 = vmatprep.subr.msk.bf16.mxu0 %vm2633_vm2, %v5717_v15  ;;  %vm2697_vm5 = vmpackc.low %vm537_vm14, %vm534_vm13  ;;  %vm434_vm13 = vcmp.eq.s32.totalorder %v3891_v50, %v3548_v9  ;;  %vm527_vm14 = vcmp.eq.s32.totalorder %v3902_v51, %v3548_v9  ;;  %5820 = vst [vmem:[#allocation62_spill] sm:$0xff] %v3993_v61  ;;  %v4695_v51 = vadd.s32 976, %v3529_v1  ;;  %v4730_v50 = vadd.s32 712, %v3529_v1 }
  0xa9   : > { %2698 = vmatprep.subr.msk.bf16.mxu1 %vm2697_vm5, %v5717_v15  ;;  %vm2635_vm8 = vmpackc.low %vm440_vm1, %vm437_vm0  ;;  %vm530_vm0 = vcmp.eq.s32.totalorder %v3905_v52, %v3548_v9  ;;  %vm426_vm1 = vcmp.eq.s32.totalorder %v3927_v53, %v3551_v10  ;;  %5821 = vst [vmem:[#allocation63_spill] sm:$0xff] %v3996_v62  ;;  %vm522_vm5 = vcmp.eq.s32.totalorder %v3946_v56, %v3551_v10  ;;  %v4742_v49 = vadd.s32 960, %v3529_v1 }
  0xaa   : > { %2636 = vmatpush2.bf16.msk.msra.mxu0 %vm2635_vm8, %v5717_v15  ;;  %vm2699_vm11 = vmpackc.low %vm536_vm4, %vm533_vm3  ;;  %vm429_vm3 = vcmp.eq.s32.totalorder %v3938_v55, %v3551_v10  ;;  %5822 = vst [vmem:[#allocation64_spill] sm:$0xff] %v3999_v63  ;;  %vm425_vm8 = vcmp.eq.s32.totalorder %v3927_v53, %v3548_v9  ;;  %v4645_v53 = vadd.s32 1000, %v3529_v1  ;;  %v4813_v13 = vadd.s32 952, %v3529_v1 }
  0xab   : > { %2700 = vmatpush2.bf16.msk.msra.mxu1 %vm2699_vm11, %v5717_v15  ;;  %vm2637_vm15 = vmpackc.low %vm435_vm7, %vm432_vm6  ;;  %vm525_vm6 = vcmp.eq.s32.totalorder %v3949_v57, %v3551_v10  ;;  %vm524_vm11 = vcmp.eq.s32.totalorder %v3949_v57, %v3548_v9  ;;  %5823 = vst [vmem:[#allocation65_spill] sm:$0xff] %v4040_v3  ;;  %v4600_v57 = vadd.s32 744, %v3529_v1  ;;  %v4827_v12 = vadd.s32 672, %v3529_v1 }
  0xac   : > { %2638 = vmatprep.subr.msk.bf16.mxu0 %vm2637_vm15, %v5717_v15  ;;  %vm2701_vm2 = vmpackc.low %vm531_vm10, %vm528_vm9  ;;  %vm428_vm9 = vcmp.eq.s32.totalorder %v3938_v55, %v3548_v9  ;;  %vm521_vm10 = vcmp.eq.s32.totalorder %v3946_v56, %v3548_v9  ;;  %vm423_vm15 = vcmp.eq.s32.totalorder %v3993_v61, %v3551_v10  ;;  %5824 = vst [vmem:[#allocation66_spill] sm:$0xff] %v4061_v54  ;;  %v5852_v56 = vmov 1.0|1.0  }
  0xad   : > { %2702 = vmatprep.subr.msk.bf16.mxu1 %vm2701_vm2, %v5717_v15  ;;  %vm2639_vm4 = vmpackc.low %vm434_vm13, %vm431_vm12  ;;  %vm420_vm13 = vcmp.eq.s32.totalorder %v3978_v59, %v3551_v10  ;;  %5825 = vst [vmem:[#allocation67_spill] sm:$0xff] %v4071_v58  ;;  %v4618_v55 = vadd.s32 992, %v3529_v1  ;;  %v4830_v11 = vadd.s32 680, %v3529_v1  ;;  %v4844_v46 = vadd.s32 928, %v3529_v1 }
  0xae   : > { %2640 = vmatpush2.bf16.msk.msra.mxu0 %vm2639_vm4, %v5717_v15  ;;  %vm2703_vm7 = vmpackc.low %vm530_vm0, %vm527_vm14  ;;  %vm516_vm0 = vcmp.eq.s32.totalorder %v3996_v62, %v3551_v10  ;;  %5826 = vst [vmem:[#allocation68_spill] sm:$0xff] %v4074_v2  ;;  %vm419_vm4 = vcmp.eq.s32.totalorder %v3978_v59, %v3548_v9  ;;  %v4550_v59 = vadd.s32 752, %v3529_v1  ;;  %v4847_v45 = vadd.s32 936, %v3529_v1 }
  0xaf   : > { %2704 = vmatpush2.bf16.msk.msra.mxu1 %vm2703_vm7, %v5717_v15  ;;  %vm2641_vm12 = vmpackc.low %vm429_vm3, %vm426_vm1  ;;  %vm519_vm1 = vcmp.eq.s32.totalorder %v3999_v63, %v3551_v10  ;;  %5827 = vst [vmem:[#allocation69_spill] sm:$0xff] %v4076_v38  ;;  %vm515_vm7 = vcmp.eq.s32.totalorder %v3996_v62, %v3548_v9  ;;  %v4516_v62 = vadd.s32 768, %v3529_v1  ;;  %v4745_v38 = vadd.s32 968, %v3529_v1 }
  0xb0   : > { %2642 = vmatprep.subr.msk.bf16.mxu0 %vm2641_vm12, %v5717_v15  ;;  %vm2705_vm14 = vmpackc.low %vm525_vm6, %vm522_vm5  ;;  %vm422_vm5 = vcmp.eq.s32.totalorder %v3993_v61, %v3548_v9  ;;  %5828 = vst [vmem:[#allocation70_spill] sm:$0xff] %v4103_v47  ;;  %v4519_v61 = vadd.s32 776, %v3529_v1  ;;  %v4863_v44 = vadd.s32 656, %v3529_v1  ;;  %v4877_v43 = vadd.s32 664, %v3529_v1 }
  0xb1   : > { %2706 = vmatprep.subr.msk.bf16.mxu1 %vm2705_vm14, %v5717_v15  ;;  %vm2643_vm2 = vmpackc.low %vm428_vm9, %vm425_vm8  ;;  %vm518_vm8 = vcmp.eq.s32.totalorder %v3999_v63, %v3548_v9  ;;  %5829 = vst [vmem:[#allocation71_spill] sm:$0xff] %v4117_v36  ;;  %vm513_vm14 = vcmp.eq.s32.totalorder %v4074_v2, %v3551_v10  ;;  %v4880_v7 = vadd.s32 912, %v3529_v1  ;;  %v4896_v6 = vadd.s32 920, %v3529_v1 }
  0xb2   : > { %2644 = vmatpush2.bf16.msk.msra.mxu0 %vm2643_vm2, %v5717_v15  ;;  %vm2707_vm3 = vmpackc.low %vm524_vm11, %vm521_vm10  ;;  %vm414_vm10 = vcmp.eq.s32.totalorder %v4040_v3, %v3551_v10  ;;  %vm417_vm11 = vcmp.eq.s32.totalorder %v4061_v54, %v3551_v10  ;;  %5830 = vst [vmem:[#allocation72_spill] sm:$0xff] %v4120_v37  ;;  %v4944_v5 = vadd.s32 896, %v3529_v1 }
  0xb3   : > { %2708 = vmatpush2.bf16.msk.msra.mxu1 %vm2707_vm3, %v5717_v15  ;;  %vm2645_vm6 = vmpackc.low %vm423_vm15, %vm420_vm13  ;;  %vm510_vm13 = vcmp.eq.s32.totalorder %v4071_v58, %v3551_v10  ;;  %5831 = vst [vmem:[#allocation73_spill] sm:$0xff] %v4131_v35  ;;  %vm509_vm3 = vcmp.eq.s32.totalorder %v4071_v58, %v3548_v9  ;;  %v4422_v58 = vadd.s32 552, %v3529_v1 }
  0xb4   : > { %2646 = vmatprep.subr.msk.bf16.mxu0 %vm2645_vm6, %v5717_v15  ;;  %vm2709_vm9 = vmpackc.low %vm519_vm1, %vm516_vm0  ;;  %5832 = vst [vmem:[#allocation74_spill] sm:$0xff] %v4134_v34  ;;  %vm413_vm0 = vcmp.eq.s32.totalorder %v4040_v3, %v3548_v9  ;;  %vm416_vm1 = vcmp.eq.s32.totalorder %v4061_v54, %v3548_v9  ;;  %vm408_vm6 = vcmp.eq.s32.totalorder %v4117_v36, %v3551_v10  ;;  %v4430_v54 = vadd.s32 800, %v3529_v1 }
  0xb5   : > { %2710 = vmatprep.subr.msk.bf16.mxu1 %vm2709_vm9, %v5717_v15  ;;  %vm2647_vm12 = vmpackc.low %vm422_vm5, %vm419_vm4  ;;  %vm512_vm4 = vcmp.eq.s32.totalorder %v4074_v2, %v3548_v9  ;;  %5833 = vst [vmem:[#allocation75_spill] sm:$0xff] %v4165_v33  ;;  %vm504_vm9 = vcmp.eq.s32.totalorder %v4131_v35, %v3551_v10  ;;  %v4270_v2 = vpack.c.bf16 %v4045_v48, %v4045_v48  ;;  %v4293_v48 = vadd.s32 592, %v3529_v1 }
  0xb6   : > { %2648 = vmatpush2.bf16.msk.msra.mxu0 %vm2647_vm12, %v5717_v15  ;;  %vm2711_vm15 = vmpackc.low %vm518_vm8, %vm515_vm7  ;;  %vm411_vm7 = vcmp.eq.s32.totalorder %v4120_v37, %v3551_v10  ;;  %5834 = vst [vmem:[#allocation76_spill] sm:$0xff] %v4168_v32  ;;  %vm407_vm12 = vcmp.eq.s32.totalorder %v4117_v36, %v3548_v9  ;;  %v4206_v36 = vadd.s32 632, %v3529_v1  ;;  %v4433_v3 = vadd.s32 808, %v3529_v1 }
  0xb7   : > { %2712 = vmatpush2.bf16.msk.msra.mxu1 %vm2711_vm15, %v5717_v15  ;;  %vm2649_vm2 = vmpackc.low %vm417_vm11, %vm414_vm10  ;;  %vm507_vm10 = vcmp.eq.s32.totalorder %v4134_v34, %v3551_v10  ;;  %5835 = vst [vmem:[#allocation77_spill] sm:$0xff] %v4176_v31  ;;  %vm503_vm15 = vcmp.eq.s32.totalorder %v4131_v35, %v3548_v9  ;;  %v4237_v35 = vpack.c.bf16 %v4013_v0, %v4013_v0  ;;  %v4256_v0 = vadd.s32 864, %v3529_v1 }
  0xb8   : > { %2650 = vmatprep.subr.msk.bf16.mxu0 %vm2649_vm2, %v5717_v15  ;;  %vm2713_vm5 = vmpackc.low %vm513_vm14, %vm510_vm13  ;;  %5836 = vst [vmem:[#allocation78_spill] sm:$0xff] %v4179_v30  ;;  %vm410_vm13 = vcmp.eq.s32.totalorder %v4120_v37, %v3548_v9  ;;  %vm402_vm2 = vcmp.eq.s32.totalorder %v4165_v33, %v3551_v10  ;;  %v4203_v37 = vadd.s32 624, %v3529_v1 }
  0xb9   : > { %2714 = vmatprep.subr.msk.bf16.mxu1 %vm2713_vm5, %v5717_v15  ;;  %vm2651_vm8 = vmpackc.low %vm416_vm1, %vm413_vm0  ;;  %vm506_vm0 = vcmp.eq.s32.totalorder %v4134_v34, %v3548_v9  ;;  %5838 = vst [vmem:[#allocation80_spill] sm:$0xff] %v4206_v36  ;;  %vm498_vm5 = vcmp.eq.s32.totalorder %v4176_v31, %v3551_v10  ;;  %v4214_v34 = vadd.s32 880, %v3529_v1 }
  0xba   : > { %2652 = vmatpush2.bf16.msk.msra.mxu0 %vm2651_vm8, %v5717_v15  ;;  %vm2715_vm11 = vmpackc.low %vm512_vm4, %vm509_vm3  ;;  %vm405_vm3 = vcmp.eq.s32.totalorder %v4168_v32, %v3551_v10  ;;  %5837 = vst [vmem:[#allocation79_spill] sm:$0xff] %v4203_v37  ;;  %vm401_vm8 = vcmp.eq.s32.totalorder %v4165_v33, %v3548_v9  ;;  %v4248_v33 = vadd.s32 616, %v3529_v1 }
  0xbb   : > { %2716 = vmatpush2.bf16.msk.msra.mxu1 %vm2715_vm11, %v5717_v15  ;;  %vm2653_vm14 = vmpackc.low %vm411_vm7, %vm408_vm6  ;;  %vm501_vm6 = vcmp.eq.s32.totalorder %v4179_v30, %v3551_v10  ;;  %5839 = vst [vmem:[#allocation81_spill] sm:$0xff] %v4214_v34  ;;  %vm497_vm11 = vcmp.eq.s32.totalorder %v4176_v31, %v3548_v9  ;;  %v351_v31 = vsub.s32 2, %v3529_v1 }
  0xbc   : > { %2654 = vmatprep.subr.msk.bf16.mxu0 %vm2653_vm14, %v5717_v15  ;;  %vm2717_vm1 = vmpackc.low %vm507_vm10, %vm504_vm9  ;;  %5840 = vst [vmem:[#allocation82_spill] sm:$0xff] %v4217_v29  ;;  %vm404_vm9 = vcmp.eq.s32.totalorder %v4168_v32, %v3548_v9  ;;  %vm588_vm14 = vcmp.eq.s32.totalorder %v4203_v37, %v3551_v10  ;;  %v4245_v32 = vadd.s32 608, %v3529_v1 }
  0xbd   : > { %2718 = vmatprep.subr.msk.bf16.mxu1 %vm2717_vm1, %v5717_v15  ;;  %vm2655_vm4 = vmpackc.low %vm410_vm13, %vm407_vm12  ;;  %vm500_vm12 = vcmp.eq.s32.totalorder %v4179_v30, %v3548_v9  ;;  %5841 = vst [vmem:[#allocation83_spill] sm:$0xff] %v4237_v35  ;;  %vm684_vm1 = vcmp.eq.s32.totalorder %v4214_v34, %v3551_v10  ;;  %v4308_v30 = vadd.s32 856, %v3529_v1  ;;  %v4472_v63 = vrot.slane %v3545_v8, %v351_v31 }
  0xbe   : > { %2656 = vmatpush2.bf16.msk.msra.mxu0 %vm2655_vm4, %v5717_v15  ;;  %vm2719_vm7 = vmpackc.low %vm506_vm0, %vm503_vm15  ;;  %vm591_vm15 = vcmp.eq.s32.totalorder %v4206_v36, %v3551_v10  ;;  %5842 = vst [vmem:[#allocation84_spill] sm:$0xff] %v4245_v32  ;;  %vm587_vm4 = vcmp.eq.s32.totalorder %v4203_v37, %v3548_v9  ;;  %v4305_v37 = vadd.s32 848, %v3529_v1  ;;  %v4501_v8 = vadd.s32 512, %v3529_v1 }
  0xbf   : > { %2720 = vmatpush2.bf16.msk.msra.mxu1 %vm2719_vm7, %v5717_v15  ;;  %vm2657_vm10 = vmpackc.low %vm405_vm3, %vm402_vm2  ;;  %5843 = vst [vmem:[#allocation85_spill] sm:$0xff] %v4248_v33  ;;  %vm687_vm2 = vcmp.eq.s32.totalorder %v4217_v29, %v3551_v10  ;;  %vm683_vm7 = vcmp.eq.s32.totalorder %v4214_v34, %v3548_v9  ;;  %v4410_v34 = vadd.s32 544, %v3529_v1  ;;  %v4513_v31 = vadd.s32 520, %v3529_v1 }
  0xc0   : > { %2658 = vmatprep.subr.msk.bf16.mxu0 %vm2657_vm10, %v5717_v15  ;;  %vm2721_vm13 = vmpackc.low %vm501_vm6, %vm498_vm5  ;;  %5844 = vst [vmem:[#allocation86_spill] sm:$0xff] %v4256_v0  ;;  %vm590_vm5 = vcmp.eq.s32.totalorder %v4206_v36, %v3548_v9  ;;  %vm582_vm10 = vcmp.eq.s32.totalorder %v4245_v32, %v3551_v10  ;;  %v4296_v36 = vadd.s32 600, %v3529_v1 }
  0xc1   : > { %2722 = vmatprep.subr.msk.bf16.mxu1 %vm2721_vm13, %v5717_v15  ;;  %vm2659_vm0 = vmpackc.low %vm404_vm9, %vm401_vm8  ;;  %5845 = vst [vmem:[#allocation87_spill] sm:$0xff] %v4259_v28  ;;  %vm686_vm8 = vcmp.eq.s32.totalorder %v4217_v29, %v3548_v9  ;;  %vm678_vm13 = vcmp.eq.s32.totalorder %v4256_v0, %v3551_v10  ;;  %v4391_v29 = vadd.s32 824, %v3529_v1 }
  0xc2   : > { %2660 = vmatpush2.bf16.msk.msra.mxu0 %vm2659_vm0, %v5717_v15  ;;  %vm2723_vm3 = vmpackc.low %vm500_vm12, %vm497_vm11  ;;  %5846 = vst [vmem:[#allocation88_spill] sm:$0xff] %v4270_v2  ;;  %vm585_vm11 = vcmp.eq.s32.totalorder %v4248_v33, %v3551_v10  ;;  %vm581_vm0 = vcmp.eq.s32.totalorder %v4245_v32, %v3548_v9  ;;  %v4339_v32 = vadd.s32 576, %v3529_v1 }
  0xc3   : > { %2724 = vmatpush2.bf16.msk.msra.mxu1 %vm2723_vm3, %v5717_v15  ;;  %vm2725_vm6 = vmpackc.low %vm591_vm15, %vm588_vm14  ;;  %5847 = vst [vmem:[#allocation89_spill] sm:$0xff] %v4293_v48  ;;  %vm681_vm14 = vcmp.eq.s32.totalorder %v4259_v28, %v3551_v10  ;;  %vm677_vm3 = vcmp.eq.s32.totalorder %v4256_v0, %v3548_v9  ;;  %v4377_v0 = vadd.s32 560, %v3529_v1 }
  0xc4   : > { %2726 = vmatprep.subr.msk.bf16.mxu0 %vm2725_vm6, %v5717_v15  ;;  %vm2789_vm9 = vmpackc.low %vm687_vm2, %vm684_vm1  ;;  %vm584_vm1 = vcmp.eq.s32.totalorder %v4248_v33, %v3548_v9  ;;  %vm576_vm6 = vcmp.eq.s32.totalorder %v4293_v48, %v3551_v10  ;;  %v4342_v33 = vadd.s32 584, %v3529_v1  ;;  %5848 = vst [vmem:[#allocation90_spill] sm:$0xff] %v4501_v8 }
  0xc5   : > { %1784 = vmatmul.mubr.bf16.vlgmr.msra.gmra.mxu0 %v4237_v35  ;;  %2790 = vmatprep.subr.msk.bf16.mxu1 %vm2789_vm9, %v5717_v15  ;;  %vm2727_vm12 = vmpackc.low %vm590_vm5, %vm587_vm4  ;;  %vm680_vm4 = vcmp.eq.s32.totalorder %v4259_v28, %v3548_v9  ;;  %vm672_vm9 = vcmp.eq.s32.totalorder %v4305_v37, %v3551_v10  ;;  %v4350_v28 = vadd.s32 832, %v3529_v1  ;;  %v4388_v35 = vadd.s32 816, %v3529_v1  ;;  %5849 = vst [vmem:[#allocation91_spill] sm:$0xff] %v4513_v31 }
  0xc6   : > { %1825 = vmatmul.mubr.bf16.vlgmr.msra.gmra.mxu1 %v4270_v2  ;;  %2728 = vmatpush1.bf16.msk.msra.mxu0 %vm2727_vm12, %v5717_v15  ;;  %vm2791_vm15 = vmpackc.low %vm686_vm8, %vm683_vm7  ;;  %vm579_vm7 = vcmp.eq.s32.totalorder %v4296_v36, %v3551_v10  ;;  %v4353_v2 = vadd.s32 840, %v3529_v1  ;;  %vm575_vm12 = vcmp.eq.s32.totalorder %v4293_v48, %v3548_v9  ;;  %v4380_v48 = vadd.s32 568, %v3529_v1  ;;  %5850 = vst [vmem:[#allocation92_spill] sm:$0xff] %v4516_v62 }
  0xc7   : > { %2792 = vmatpush1.bf16.msk.msra.mxu1 %vm2791_vm15, %v5717_v15  ;;  %vm2729_vm2 = vmpackc.low %vm585_vm11, %vm582_vm10  ;;  %vm675_vm10 = vcmp.eq.s32.totalorder %v4308_v30, %v3551_v10  ;;  %vm671_vm15 = vcmp.eq.s32.totalorder %v4305_v37, %v3548_v9  ;;  %5851 = vst [vmem:[#allocation93_spill] sm:$0xff] %v4519_v61 }
  0xc8   : > { %2730 = vmatprep.subr.msk.bf16.mxu0 %vm2729_vm2, %v5717_v15  ;;  %vm2793_vm5 = vmpackc.low %vm681_vm14, %vm678_vm13  ;;  %vm578_vm13 = vcmp.eq.s32.totalorder %v4296_v36, %v3548_v9  ;;  %vm570_vm2 = vcmp.eq.s32.totalorder %v4339_v32, %v3551_v10 }
  0xc9   : > { %2794 = vmatprep.subr.msk.bf16.mxu1 %vm2793_vm5, %v5717_v15  ;;  %vm2731_vm8 = vmpackc.low %vm584_vm1, %vm581_vm0  ;;  %vm674_vm0 = vcmp.eq.s32.totalorder %v4308_v30, %v3548_v9  ;;  %vm666_vm5 = vcmp.eq.s32.totalorder %v4350_v28, %v3551_v10 }
  0xca   : > { %2732 = vmatpush1.bf16.msk.msra.mxu0 %vm2731_vm8, %v5717_v15  ;;  %vm2795_vm11 = vmpackc.low %vm680_vm4, %vm677_vm3  ;;  %vm573_vm3 = vcmp.eq.s32.totalorder %v4342_v33, %v3551_v10  ;;  %vm569_vm8 = vcmp.eq.s32.totalorder %v4339_v32, %v3548_v9 }
  0xcb   : > { %2796 = vmatpush1.bf16.msk.msra.mxu1 %vm2795_vm11, %v5717_v15  ;;  %vm2733_vm14 = vmpackc.low %vm579_vm7, %vm576_vm6  ;;  %vm669_vm6 = vcmp.eq.s32.totalorder %v4353_v2, %v3551_v10  ;;  %vm665_vm11 = vcmp.eq.s32.totalorder %v4350_v28, %v3548_v9 }
  0xcc   : > { %2734 = vmatprep.subr.msk.bf16.mxu0 %vm2733_vm14, %v5717_v15  ;;  %vm2797_vm1 = vmpackc.low %vm675_vm10, %vm672_vm9  ;;  %vm572_vm9 = vcmp.eq.s32.totalorder %v4342_v33, %v3548_v9  ;;  %vm564_vm14 = vcmp.eq.s32.totalorder %v4377_v0, %v3551_v10 }
  0xcd   : > { %2798 = vmatprep.subr.msk.bf16.mxu1 %vm2797_vm1, %v5717_v15  ;;  %vm2735_vm4 = vmpackc.low %vm578_vm13, %vm575_vm12  ;;  %vm668_vm12 = vcmp.eq.s32.totalorder %v4353_v2, %v3548_v9  ;;  %vm660_vm1 = vcmp.eq.s32.totalorder %v4388_v35, %v3551_v10 }
  0xce   : > { %2736 = vmatpush1.bf16.msk.msra.mxu0 %vm2735_vm4, %v5717_v15  ;;  %vm2799_vm7 = vmpackc.low %vm674_vm0, %vm671_vm15  ;;  %vm567_vm15 = vcmp.eq.s32.totalorder %v4380_v48, %v3551_v10  ;;  %vm563_vm4 = vcmp.eq.s32.totalorder %v4377_v0, %v3548_v9 }
  0xcf   : > { %2800 = vmatpush1.bf16.msk.msra.mxu1 %vm2799_vm7, %v5717_v15  ;;  %vm2737_vm10 = vmpackc.low %vm573_vm3, %vm570_vm2  ;;  %vm663_vm2 = vcmp.eq.s32.totalorder %v4391_v29, %v3551_v10  ;;  %vm659_vm7 = vcmp.eq.s32.totalorder %v4388_v35, %v3548_v9 }
  0xd0   : > { %2738 = vmatprep.subr.msk.bf16.mxu0 %vm2737_vm10, %v5717_v15  ;;  %vm2801_vm13 = vmpackc.low %vm669_vm6, %vm666_vm5  ;;  %vm566_vm5 = vcmp.eq.s32.totalorder %v4380_v48, %v3548_v9 }
  0xd1   : > { %2802 = vmatprep.subr.msk.bf16.mxu1 %vm2801_vm13, %v5717_v15  ;;  %vm2739_vm0 = vmpackc.low %vm572_vm9, %vm569_vm8  ;;  %vm662_vm8 = vcmp.eq.s32.totalorder %v4391_v29, %v3548_v9  ;;  %vm558_vm9 = vcmp.eq.s32.totalorder %v4410_v34, %v3551_v10  ;;  %vm654_vm13 = vcmp.eq.s32.totalorder %v4430_v54, %v3551_v10 }
  0xd2   : > { %2740 = vmatpush1.bf16.msk.msra.mxu0 %vm2739_vm0, %v5717_v15  ;;  %vm2803_vm3 = vmpackc.low %vm668_vm12, %vm665_vm11  ;;  %vm561_vm11 = vcmp.eq.s32.totalorder %v4422_v58, %v3551_v10 }
  0xd3   : > { %2804 = vmatpush1.bf16.msk.msra.mxu1 %vm2803_vm3, %v5717_v15  ;;  %vm2741_vm6 = vmpackc.low %vm567_vm15, %vm564_vm14  ;;  %vm657_vm14 = vcmp.eq.s32.totalorder %v4433_v3, %v3551_v10  ;;  %vm557_vm15 = vcmp.eq.s32.totalorder %v4410_v34, %v3548_v9  ;;  %vm656_vm3 = vcmp.eq.s32.totalorder %v4433_v3, %v3548_v9 }
  0xd4   : > { %2742 = vmatprep.subr.msk.bf16.mxu0 %vm2741_vm6, %v5717_v15  ;;  %vm2805_vm10 = vmpackc.low %vm663_vm2, %vm660_vm1  ;;  %vm560_vm1 = vcmp.eq.s32.totalorder %v4422_v58, %v3548_v9  ;;  %vm653_vm2 = vcmp.eq.s32.totalorder %v4430_v54, %v3548_v9 }
  0xd5   : > { %2806 = vmatprep.subr.msk.bf16.mxu1 %vm2805_vm10, %v5717_v15  ;;  %vm2743_vm12 = vmpackc.low %vm566_vm5, %vm563_vm4  ;;  %vm552_vm5 = vcmp.eq.s32.totalorder %v4454_v27, %v3551_v10  ;;  %vm551_vm10 = vcmp.eq.s32.totalorder %v4454_v27, %v3548_v9 }
  0xd6   : > { %2744 = vmatpush1.bf16.msk.msra.mxu0 %vm2743_vm12, %v5717_v15  ;;  %vm2807_vm0 = vmpackc.low %vm662_vm8, %vm659_vm7  ;;  %vm555_vm7 = vcmp.eq.s32.totalorder %v4463_v26, %v3551_v10  ;;  %vm648_vm8 = vcmp.eq.s32.totalorder %v4466_v25, %v3551_v10  ;;  %vm554_vm12 = vcmp.eq.s32.totalorder %v4463_v26, %v3548_v9 }
  0xd7   : > { %2808 = vmatpush1.bf16.msk.msra.mxu1 %vm2807_vm0, %v5717_v15  ;;  %vm2745_vm4 = vmpackc.low %vm561_vm11, %vm558_vm9  ;;  %vm651_vm9 = vcmp.eq.s32.totalorder %v4469_v24, %v3551_v10  ;;  %vm546_vm0 = vcmp.eq.s32.totalorder %v4501_v8, %v3551_v10 }
  0xd8   : > { %2746 = vmatprep.subr.msk.bf16.mxu0 %vm2745_vm4, %v5717_v15  ;;  %vm2809_vm6 = vmpackc.low %vm657_vm14, %vm654_vm13  ;;  %vm647_vm13 = vcmp.eq.s32.totalorder %v4466_v25, %v3548_v9  ;;  %vm650_vm14 = vcmp.eq.s32.totalorder %v4469_v24, %v3548_v9  ;;  %vm645_vm4 = vcmp.eq.s32.totalorder %v4519_v61, %v3551_v10 }
  0xd9   : > { %2810 = vmatprep.subr.msk.bf16.mxu1 %vm2809_vm6, %v5717_v15  ;;  %vm2747_vm11 = vmpackc.low %vm560_vm1, %vm557_vm15  ;;  %vm545_vm6 = vcmp.eq.s32.totalorder %v4501_v8, %v3548_v9  ;;  %v5886_v8 = vld [vmem:[#allocation92_spill] sm:$0xff] }
  0xda   : > { %2748 = vmatpush1.bf16.msk.msra.mxu0 %vm2747_vm11, %v5717_v15  ;;  %vm2811_vm15 = vmpackc.low %vm656_vm3, %vm653_vm2  ;;  %vm549_vm2 = vcmp.eq.s32.totalorder %v4513_v31, %v3551_v10  ;;  %vm642_vm3 = vcmp.eq.s32.totalorder %v4516_v62, %v3551_v10  ;;  %vm641_vm11 = vcmp.eq.s32.totalorder %v4516_v62, %v3548_v9  ;;  %v4941_v62 = vadd.s32 648, %v3529_v1 }
  0xdb   : > { %2812 = vmatpush1.bf16.msk.msra.mxu1 %vm2811_vm15, %v5717_v15  ;;  %vm2749_vm1 = vmpackc.low %vm555_vm7, %vm552_vm5  ;;  %vm548_vm7 = vcmp.eq.s32.totalorder %v4513_v31, %v3548_v9  ;;  %vm638_vm15 = vcmp.eq.s32.totalorder %v4562_v23, %v3548_v9  ;;  %v5887_v31 = vld [vmem:[#allocation93_spill] sm:$0xff] }
  0xdc   : > { %2750 = vmatprep.subr.msk.bf16.mxu0 %vm2749_vm1, %v5717_v15  ;;  %vm2813_vm5 = vmpackc.low %vm651_vm9, %vm648_vm8  ;;  %v1698_v15 = vld [vmem:[%s180_s9 + $0x8] sm:$0xff]  ;;  %vm644_vm9 = vcmp.eq.s32.totalorder %v4519_v61, %v3548_v9  ;;  %vm735_vm1 = vcmp.eq.s32.totalorder %v4568_v21, %v3551_v10  ;;  %v4927_v61 = vadd.s32 640, %v3529_v1  ;;  %5863 = vst [vmem:[#allocation98_spill] sm:$0xff] %v4941_v62 }
  0xdd   : > { %2814 = vmatprep.subr.msk.bf16.mxu1 %vm2813_vm5, %v5852_v56  ;;  %vm2751_vm8 = vmpackc.low %vm554_vm12, %vm551_vm10  ;;  %vm639_vm12 = vcmp.eq.s32.totalorder %v4562_v23, %v3551_v10  ;;  %vm732_vm5 = vcmp.eq.s32.totalorder %v4565_v22, %v3551_v10  ;;  %v4648_v19 = vrot.slane %v1698_v15, %v3981_v60  ;;  %v1718_v18 = vcombine.high %v1698_v15, %v1698_v15 }
  0xde   : > { %2752 = vmatpush1.bf16.msk.msra.mxu0 %vm2751_vm8, %v5852_v56  ;;  %vm2815_vm10 = vmpackc.low %vm650_vm14, %vm647_vm13  ;;  %vm731_vm14 = vcmp.eq.s32.totalorder %v4565_v22, %v3548_v9  ;;  %v4664_v15 = vadd.s32 720, %v3529_v1 }
  0xdf   : > { %2816 = vmatpush1.bf16.msk.msra.mxu1 %vm2815_vm10, %v5852_v56  ;;  %vm2753_vm13 = vmpackc.low %vm549_vm2, %vm546_vm0  ;;  %vm734_vm0 = vcmp.eq.s32.totalorder %v4568_v21, %v3548_v9  ;;  %vm630_vm2 = vcmp.eq.s32.totalorder %v4597_v20, %v3551_v10  ;;  %vm633_vm10 = vcmp.eq.s32.totalorder %v4600_v57, %v3551_v10  ;;  %v1733_v16 = vcombine.high %v4648_v19, %v4648_v19 }
  0xe0   : > { %2754 = vmatprep.subr.msk.bf16.mxu0 %vm2753_vm13, %v5852_v56  ;;  %vm2817_vm8 = vmpackc.low %vm645_vm4, %vm642_vm3  ;;  %5853 = vst [vmem:[#allocation94_spill] sm:$0xff] %v4664_v15  ;;  %vm726_vm4 = vcmp.eq.s32.totalorder %v4618_v55, %v3551_v10  ;;  %v4681_v52 = vrot.slane %v1718_v18, %v3981_v60  ;;  %vm632_vm13 = vcmp.eq.s32.totalorder %v4600_v57, %v3548_v9  ;;  %v4698_v18 = vadd.s32 984, %v3529_v1 }
  0xe1   : > { %2818 = vmatprep.subr.msk.bf16.mxu1 %vm2817_vm8, %v5852_v56  ;;  %vm2755_vm3 = vmpackc.low %vm548_vm7, %vm545_vm6  ;;  %vm629_vm7 = vcmp.eq.s32.totalorder %v4597_v20, %v3548_v9  ;;  %vm5855_vm8 = vcmp.eq.s32.totalorder %v4550_v59, %v3551_v10  ;;  %v4711_v60 = vpack.c.bf16 %v1733_v16, %v1733_v16  ;;  %v4727_v16 = vadd.s32 704, %v3529_v1 }
  0xe2   : > { %5854 = vst [vmem:[#allocation95_spill] sm:$0xff] %v4681_v52  ;;  %2756 = vmatpush1.bf16.msk.msra.mxu0 %vm2755_vm3, %v5852_v56  ;;  %vm2819_vm6 = vmpackc.low %vm644_vm9, %vm641_vm11  ;;  %vm729_vm9 = vcmp.eq.s32.totalorder %v4645_v53, %v3551_v10  ;;  %vm725_vm3 = vcmp.eq.s32.totalorder %v4618_v55, %v3548_v9  ;;  %v1734_v47 = vcombine.high %v4681_v52, %v4681_v52  ;;  %v4958_v52 = vadd.s32 904, %v3529_v1 }
  0xe3   : > { %2820 = vmatpush1.bf16.msk.msra.mxu1 %vm2819_vm6, %v5852_v56  ;;  %vm2757_vm11 = vmpackc.low %vm639_vm12, %vm5855_vm8  ;;  %5856 = vst [vmem:[#allocation96_spill] sm:$0xff] %v4711_v60  ;;  %vm728_vm6 = vcmp.eq.s32.totalorder %v4645_v53, %v3548_v9  ;;  %1865 = vmatprep.mubr.bf16.mxu0 %v4711_v60  ;;  %vm626_vm8 = vcmp.eq.s32.totalorder %v4676_v17, %v3548_v9  ;;  %v4780_v60 = vadd.s32 696, %v3529_v1 }
  0xe4   : > { %2758 = vmatprep.subr.msk.bf16.mxu0 %vm2757_vm11, %v5852_v56  ;;  %vm2821_vm12 = vmpackc.low %vm735_vm1, %vm732_vm5  ;;  %vm5857_vm11 = vcmp.eq.s32.totalorder %v4550_v59, %v3548_v9  ;;  %v4748_v14 = vpack.c.bf16 %v1734_v47, %v1734_v47  ;;  %vm623_vm5 = vcmp.eq.s32.totalorder %v4664_v15, %v3548_v9  ;;  %v4777_v47 = vadd.s32 688, %v3529_v1 }
  0xe5   : > { %2822 = vmatprep.subr.msk.bf16.mxu1 %vm2821_vm12, %v5852_v56  ;;  %vm2759_vm1 = vmpackc.low %vm638_vm15, %vm5857_vm11  ;;  %vm720_vm12 = vcmp.eq.s32.totalorder %v4695_v51, %v3551_v10  ;;  %vm723_vm11 = vcmp.eq.s32.totalorder %v4698_v18, %v3551_v10 }
  0xe6   : > { %5858 = vst [vmem:[#allocation97_spill] sm:$0xff] %v4748_v14  ;;  %2760 = vmatpush2.bf16.msk.msra.mxu0 %vm2759_vm1, %v5852_v56  ;;  %vm2823_vm15 = vmpackc.low %vm734_vm0, %vm731_vm14  ;;  %vm719_vm0 = vcmp.eq.s32.totalorder %v4695_v51, %v3548_v9  ;;  %1906 = vmatprep.mubr.bf16.mxu1 %v4748_v14  ;;  %v4797_v14 = vadd.s32 944, %v3529_v1  ;;  %vm620_vm1 = vcmp.eq.s32.totalorder %v4730_v50, %v3548_v9 }
  0xe7   : > { %2824 = vmatpush2.bf16.msk.msra.mxu1 %vm2823_vm15, %v5852_v56  ;;  %vm2761_vm14 = vmpackc.low %vm633_vm10, %vm630_vm2  ;;  %vm618_vm10 = vcmp.eq.s32.totalorder %v4727_v16, %v3551_v10  ;;  %vm621_vm15 = vcmp.eq.s32.totalorder %v4730_v50, %v3551_v10 }
  0xe8   : > { %2762 = vmatprep.subr.msk.bf16.mxu0 %vm2761_vm14, %v5852_v56  ;;  %vm2825_vm2 = vmpackc.low %vm729_vm9, %vm726_vm4  ;;  %vm714_vm9 = vcmp.eq.s32.totalorder %v4742_v49, %v3551_v10  ;;  %vm717_vm14 = vcmp.eq.s32.totalorder %v4745_v38, %v3551_v10 }
  0xe9   : > { %2826 = vmatprep.subr.msk.bf16.mxu1 %vm2825_vm2, %v5852_v56  ;;  %vm2763_vm4 = vmpackc.low %vm632_vm13, %vm629_vm7  ;;  %vm612_vm13 = vcmp.eq.s32.totalorder %v4777_v47, %v3551_v10  ;;  %vm661_vm2 = vcmp.eq.s32.totalorder %v4388_v35, %v4472_v63 }
  0xea   : > { %2764 = vmatpush2.bf16.msk.msra.mxu0 %vm2763_vm4, %v5852_v56  ;;  %vm2827_vm7 = vmpackc.low %vm728_vm6, %vm725_vm3  ;;  %vm5859_vm4 = vcmp.eq.s32.totalorder %v4664_v15, %v3551_v10  ;;  %vm5860_vm3 = vcmp.eq.s32.totalorder %v4676_v17, %v3551_v10  ;;  %v5039_v15 = vpack.c.bf16 %v4648_v19, %v4648_v19 }
  0xeb   : > { %2828 = vmatpush2.bf16.msk.msra.mxu1 %vm2827_vm7, %v5852_v56  ;;  %vm2765_vm6 = vmpackc.low %vm5860_vm3, %vm5859_vm4  ;;  %vm708_vm4 = vcmp.eq.s32.totalorder %v4797_v14, %v3551_v10  ;;  %vm611_vm3 = vcmp.eq.s32.totalorder %v4777_v47, %v3548_v9 }
  0xec   : > { %2766 = vmatprep.subr.msk.bf16.mxu0 %vm2765_vm6, %v5852_v56  ;;  %vm2829_vm7 = vmpackc.low %vm723_vm11, %vm720_vm12  ;;  %vm711_vm11 = vcmp.eq.s32.totalorder %v4813_v13, %v3551_v10  ;;  %vm608_vm6 = vcmp.eq.s32.totalorder %v4830_v11, %v3548_v9 }
  0xed   : > { %2830 = vmatprep.subr.msk.bf16.mxu1 %vm2829_vm7, %v5852_v56  ;;  %vm2767_vm12 = vmpackc.low %vm626_vm8, %vm623_vm5  ;;  %vm5861_vm8 = vcmp.eq.s32.totalorder %v4698_v18, %v3548_v9  ;;  %vm710_vm7 = vcmp.eq.s32.totalorder %v4813_v13, %v3548_v9 }
  0xee   : > { %2768 = vmatpush2.bf16.msk.msra.mxu0 %vm2767_vm12, %v5852_v56  ;;  %vm2831_vm5 = vmpackc.low %vm5861_vm8, %vm719_vm0  ;;  %vm702_vm12 = vcmp.eq.s32.totalorder %v4844_v46, %v3551_v10  ;;  %vm705_vm8 = vcmp.eq.s32.totalorder %v4847_v45, %v3551_v10 }
  0xef   : > { %2832 = vmatpush2.bf16.msk.msra.mxu1 %vm2831_vm5, %v5852_v56  ;;  %vm2769_vm0 = vmpackc.low %vm621_vm15, %vm618_vm10  ;;  %vm701_vm15 = vcmp.eq.s32.totalorder %v4844_v46, %v3548_v9  ;;  %vm602_vm5 = vcmp.eq.s32.totalorder %v4877_v43, %v3548_v9 }
  0xf0   : > { %2770 = vmatprep.subr.msk.bf16.mxu0 %vm2769_vm0, %v5852_v56  ;;  %vm2833_vm10 = vmpackc.low %vm717_vm14, %vm714_vm9  ;;  %vm5862_vm0 = vcmp.eq.s32.totalorder %v4727_v16, %v3548_v9  ;;  %vm695_vm14 = vcmp.eq.s32.totalorder %v4880_v7, %v3548_v9 }
  0xf1   : > { %2834 = vmatprep.subr.msk.bf16.mxu1 %vm2833_vm10, %v5852_v56  ;;  %vm2771_vm9 = vmpackc.low %vm620_vm1, %vm5862_vm0  ;;  %vm5864_vm10 = vcmp.eq.s32.totalorder %v4742_v49, %v3548_v9  ;;  %vm5865_vm1 = vcmp.eq.s32.totalorder %v4745_v38, %v3548_v9 }
  0xf2   : > { %2772 = vmatpush2.bf16.msk.msra.mxu0 %vm2771_vm9, %v5852_v56  ;;  %vm2835_vm0 = vmpackc.low %vm5865_vm1, %vm5864_vm10  ;;  %vm5866_vm10 = vcmp.eq.s32.totalorder %v4780_v60, %v3551_v10  ;;  %vm544_vm9 = vcmp.eq.s32.totalorder %v3823_v42, %v4472_v63  ;;  %v5895_v42 = vld [vmem:[#allocation51_spill] sm:$0xff] }
  0xf3   : > { %2836 = vmatpush2.bf16.msk.msra.mxu1 %vm2835_vm0, %v5852_v56  ;;  %vm2773_vm1 = vmpackc.low %vm5866_vm10, %vm612_vm13  ;;  %vm698_vm0 = vcmp.eq.s32.totalorder %v4896_v6, %v3548_v9  ;;  %vm689_vm10 = vcmp.eq.s32.totalorder %v4944_v5, %v3548_v9 }
  0xf4   : > { %2774 = vmatprep.subr.msk.bf16.mxu0 %vm2773_vm1, %v5852_v56  ;;  %vm2837_vm13 = vmpackc.low %vm711_vm11, %vm708_vm4  ;;  %vm5867_vm4 = vcmp.eq.s32.totalorder %v4780_v60, %v3548_v9  ;;  %vm597_vm1 = vcmp.eq.s32.totalorder %v4941_v62, %v3551_v10 }
  0xf5   : > { %2838 = vmatprep.subr.msk.bf16.mxu1 %vm2837_vm13, %v5852_v56  ;;  %vm2775_vm11 = vmpackc.low %vm5867_vm4, %vm611_vm3  ;;  %vm5868_vm13 = vcmp.eq.s32.totalorder %v4797_v14, %v3548_v9 }
  0xf6   : > { %2776 = vmatpush2.bf16.msk.msra.mxu0 %vm2775_vm11, %v5852_v56  ;;  %vm2839_vm3 = vmpackc.low %vm710_vm7, %vm5868_vm13  ;;  %vm5869_vm7 = vcmp.eq.s32.totalorder %v4827_v12, %v3551_v10  ;;  %vm5870_vm13 = vcmp.eq.s32.totalorder %v4830_v11, %v3551_v10  ;;  %vm541_vm11 = vcmp.eq.s32.totalorder %v3820_v41, %v4472_v63  ;;  %v5894_v41 = vld [vmem:[#allocation50_spill] sm:$0xff] }
  0xf7   : > { %2840 = vmatpush2.bf16.msk.msra.mxu1 %vm2839_vm3, %v5852_v56  ;;  %vm2777_vm4 = vmpackc.low %vm5870_vm13, %vm5869_vm7  ;;  %vm445_vm13 = vcmp.eq.s32.totalorder %v3809_v39, %v4472_v63  ;;  %v5891_v39 = vld [vmem:[#allocation48_spill] sm:$0xff]  ;;  %vm535_vm3 = vcmp.eq.s32.totalorder %v5894_v41, %v4472_v63  ;;  %v5902_v41 = vld [vmem:[#allocation53_spill] sm:$0xff] }
  0xf8   : > { %2778 = vmatprep.subr.msk.bf16.mxu0 %vm2777_vm4, %v5852_v56  ;;  %vm2841_vm7 = vmpackc.low %vm705_vm8, %vm702_vm12  ;;  %vm5871_vm12 = vcmp.eq.s32.totalorder %v4827_v12, %v3548_v9 }
  0xf9   : > { %2842 = vmatprep.subr.msk.bf16.mxu1 %vm2841_vm7, %v5852_v56  ;;  %vm2779_vm8 = vmpackc.low %vm608_vm6, %vm5871_vm12  ;;  %vm5872_vm6 = vcmp.eq.s32.totalorder %v4847_v45, %v3548_v9 }
  0xfa   : > { %2780 = vmatpush2.bf16.msk.msra.mxu0 %vm2779_vm8, %v5852_v56  ;;  %vm2843_vm12 = vmpackc.low %vm5872_vm6, %vm701_vm15  ;;  %vm5873_vm15 = vcmp.eq.s32.totalorder %v4863_v44, %v3551_v10  ;;  %vm5874_vm6 = vcmp.eq.s32.totalorder %v4877_v43, %v3551_v10 }
  0xfb   : > { %2844 = vmatpush2.bf16.msk.msra.mxu1 %vm2843_vm12, %v5852_v56  ;;  %vm2781_vm4 = vmpackc.low %vm5874_vm6, %vm5873_vm15  ;;  %vm5875_vm12 = vcmp.eq.s32.totalorder %v4880_v7, %v3551_v10  ;;  %vm5876_vm15 = vcmp.eq.s32.totalorder %v4896_v6, %v3551_v10 }
  0xfc   : > { %2782 = vmatprep.subr.msk.bf16.mxu0 %vm2781_vm4, %v5852_v56  ;;  %vm2845_vm6 = vmpackc.low %vm5876_vm15, %vm5875_vm12  ;;  %vm5877_vm4 = vcmp.eq.s32.totalorder %v4863_v44, %v3548_v9  ;;  %vm703_vm15 = vcmp.eq.s32.totalorder %v4844_v46, %v4472_v63 }
  0xfd   : > { %2846 = vmatprep.subr.msk.bf16.mxu1 %vm2845_vm6, %v5852_v56  ;;  %vm2783_vm12 = vmpackc.low %vm602_vm5, %vm5877_vm4 }
  0xfe   : > { %2784 = vmatpush2.bf16.msk.msra.mxu0 %vm2783_vm12, %v5852_v56  ;;  %vm2847_vm5 = vmpackc.low %vm698_vm0, %vm695_vm14  ;;  %vm5878_vm12 = vcmp.eq.s32.totalorder %v4927_v61, %v3551_v10 }
  0xff   : > { %2848 = vmatpush2.bf16.msk.msra.mxu1 %vm2847_vm5, %v5852_v56  ;;  %vm2785_vm14 = vmpackc.low %vm597_vm1, %vm5878_vm12  ;;  %vm5879_vm5 = vcmp.eq.s32.totalorder %v4944_v5, %v3551_v10  ;;  %vm5880_vm1 = vcmp.eq.s32.totalorder %v4958_v52, %v3551_v10  ;;  %v5884_v10 = vld [vmem:[#allocation95_spill] sm:$0xff] }
 0x100   : > { %2786 = vmatprep.subr.msk.bf16.mxu0 %vm2785_vm14, %v5852_v56  ;;  %vm2849_vm12 = vmpackc.low %vm5880_vm1, %vm5879_vm5  ;;  %vm5881_vm14 = vcmp.eq.s32.totalorder %v4927_v61, %v3548_v9  ;;  %vm5882_vm5 = vcmp.eq.s32.totalorder %v4941_v62, %v3548_v9  ;;  %v5216_v19 = vpack.c.bf16 %v5884_v10, %v5884_v10  ;;  %v5885_v62 = vld [vmem:[#allocation18_spill] sm:$0xff]  ;;  %v5896_v10 = vld [vmem:[#allocation21_spill] sm:$0xff] }
 0x101   : > { %2850 = vmatprep.subr.msk.bf16.mxu1 %vm2849_vm12, %v5852_v56  ;;  %vm2787_vm1 = vmpackc.low %vm5882_vm5, %vm5881_vm14  ;;  %vm5883_vm12 = vcmp.eq.s32.totalorder %v4958_v52, %v3548_v9  ;;  %vm400_vm5 = vcmp.eq.s32.totalorder %v5885_v62, %v4472_v63  ;;  %v5889_v9 = vld [vmem:[#allocation19_spill] sm:$0xff]  ;;  %v5890_v62 = vld [vmem:[#allocation20_spill] sm:$0xff]  ;;  %vm391_vm0 = vcmp.eq.s32.totalorder %v5896_v10, %v4472_v63 }
 0x102   : > { %2788 = vmatpush2.bf16.msk.msra.mxu0 %vm2787_vm1, %v5852_v56  ;;  %vm2851_vm14 = vmpackc.low %vm5883_vm12, %vm689_vm10  ;;  %vm5888_vm10 = vcmp.eq.s32.totalorder %v3812_v40, %v4472_v63  ;;  %vm493_vm8 = vcmp.eq.s32.totalorder %v5889_v9, %v4472_v63  ;;  %vm496_vm4 = vcmp.eq.s32.totalorder %v5890_v62, %v4472_v63  ;;  %vm439_vm1 = vcmp.eq.s32.totalorder %v5891_v39, %v4472_v63  ;;  %v5892_v40 = vld [vmem:[#allocation49_spill] sm:$0xff]  ;;  %v5897_v9 = vld [vmem:[#allocation22_spill] sm:$0xff] }
 0x103   : > { %2852 = vmatpush2.bf16.msk.msra.mxu1 %vm2851_vm14, %v5852_v56  ;;  %vm2869_vm12 = vmpackc.low %vm5888_vm10, %vm445_vm13  ;;  %vm442_vm13 = vcmp.eq.s32.totalorder %v5892_v40, %v4472_v63  ;;  %vm5893_vm10 = vcmp.eq.s32.totalorder %v3534_v4, %v4472_v63  ;;  %v5898_v4 = vld [vmem:[#allocation23_spill] sm:$0xff]  ;;  %v5899_v62 = vld [vmem:[#allocation24_spill] sm:$0xff] }
 0x104   : > { %2987 = vmatprep.subr.msk.bf16.mxu0 %vm2869_vm12, %v5852_v56  ;;  %vm2901_vm14 = vmpackc.low %vm544_vm9, %vm541_vm11  ;;  %vm538_vm9 = vcmp.eq.s32.totalorder %v5895_v42, %v4472_v63  ;;  %vm490_vm6 = vcmp.eq.s32.totalorder %v5899_v62, %v4472_v63  ;;  %v5900_v39 = vld [vmem:[#allocation69_spill] sm:$0xff]  ;;  %v5901_v40 = vld [vmem:[#allocation52_spill] sm:$0xff] }
 0x105   : > { %1866 = vmatmul.mubr.bf16.vlgmr.msra.gmra.mxu0 %v5039_v15  ;;  %3009 = vmatprep.subr.msk.bf16.mxu1 %vm2901_vm14, %v5852_v56  ;;  %vm2853_vm12 = vmpackc.low %vm400_vm5, %vm5893_vm10  ;;  %vm394_vm14 = vcmp.eq.s32.totalorder %v5897_v9, %v4472_v63  ;;  %vm487_vm10 = vcmp.eq.s32.totalorder %v5898_v4, %v4472_v63  ;;  %v5903_v42 = vld [vmem:[#allocation70_spill] sm:$0xff]  ;;  %v5905_v9 = vld [vmem:[#allocation55_spill] sm:$0xff] }
 0x106   : > { %1907 = vmatmul.mubr.bf16.vlgmr.msra.gmra.mxu1 %v5216_v19  ;;  %2988 = vmatpush3.bf16.msk.msra.mxu0 %vm2853_vm12, %v5852_v56  ;;  %vm2885_vm11 = vmpackc.low %vm496_vm4, %vm493_vm8  ;;  %vm433_vm4 = vcmp.eq.s32.totalorder %v5901_v40, %v4472_v63  ;;  %vm436_vm12 = vcmp.eq.s32.totalorder %v5902_v41, %v4472_v63  ;;  %v5904_v10 = vld [vmem:[#allocation54_spill] sm:$0xff]  ;;  %v5906_v4 = vld [vmem:[#allocation25_spill] sm:$0xff] }
 0x107   : > { %3010 = vmatpush3.bf16.msk.msra.mxu1 %vm2885_vm11, %v5852_v56  ;;  %vm2871_vm5 = vmpackc.low %vm442_vm13, %vm439_vm1  ;;  %1947 = vmatprep.mubr.bf16.mxu0 %v5900_v39  ;;  %vm529_vm13 = vcmp.eq.s32.totalorder %v5904_v10, %v4472_v63  ;;  %vm532_vm11 = vcmp.eq.s32.totalorder %v5905_v9, %v4472_v63  ;;  %v5907_v62 = vld [vmem:[#allocation26_spill] sm:$0xff]  ;;  %v5908_v39 = vld [vmem:[#allocation27_spill] sm:$0xff] }
 0x108   : > { %2989 = vmatprep.subr.msk.bf16.mxu0 %vm2871_vm5, %v5852_v56  ;;  %vm2903_vm8 = vmpackc.low %vm538_vm9, %vm535_vm3  ;;  %1987 = vmatprep.mubr.bf16.mxu1 %v5903_v42  ;;  %vm385_vm9 = vcmp.eq.s32.totalorder %v5906_v4, %v4472_v63  ;;  %vm388_vm5 = vcmp.eq.s32.totalorder %v5907_v62, %v4472_v63  ;;  %v5909_v40 = vld [vmem:[#allocation28_spill] sm:$0xff]  ;;  %v5911_v42 = vld [vmem:[#allocation57_spill] sm:$0xff] }
 0x109   : > { %3011 = vmatprep.subr.msk.bf16.mxu1 %vm2903_vm8, %v5852_v56  ;;  %vm2855_vm1 = vmpackc.low %vm394_vm14, %vm391_vm0  ;;  %vm481_vm0 = vcmp.eq.s32.totalorder %v5908_v39, %v4472_v63  ;;  %vm484_vm14 = vcmp.eq.s32.totalorder %v5909_v40, %v4472_v63  ;;  %v5910_v41 = vld [vmem:[#allocation56_spill] sm:$0xff]  ;;  %v5912_v10 = vld [vmem:[#allocation58_spill] sm:$0xff] }
 0x10a   : > { %2990 = vmatpush3.bf16.msk.msra.mxu0 %vm2855_vm1, %v5852_v56  ;;  %vm2887_vm3 = vmpackc.low %vm490_vm6, %vm487_vm10  ;;  %vm427_vm6 = vcmp.eq.s32.totalorder %v5910_v41, %v4472_v63  ;;  %vm430_vm10 = vcmp.eq.s32.totalorder %v5911_v42, %v4472_v63  ;;  %v5913_v9 = vld [vmem:[#allocation59_spill] sm:$0xff]  ;;  %v5914_v4 = vld [vmem:[#allocation29_spill] sm:$0xff] }
 0x10b   : > { %3012 = vmatpush3.bf16.msk.msra.mxu1 %vm2887_vm3, %v5852_v56  ;;  %vm2873_vm7 = vmpackc.low %vm436_vm12, %vm433_vm4  ;;  %vm523_vm4 = vcmp.eq.s32.totalorder %v5912_v10, %v4472_v63  ;;  %vm526_vm12 = vcmp.eq.s32.totalorder %v5913_v9, %v4472_v63  ;;  %v5915_v62 = vld [vmem:[#allocation30_spill] sm:$0xff]  ;;  %v5916_v39 = vld [vmem:[#allocation31_spill] sm:$0xff] }
 0x10c   : > { %2991 = vmatprep.subr.msk.bf16.mxu0 %vm2873_vm7, %v5852_v56  ;;  %vm2905_vm8 = vmpackc.low %vm532_vm11, %vm529_vm13  ;;  %vm379_vm7 = vcmp.eq.s32.totalorder %v5914_v4, %v4472_v63  ;;  %vm382_vm13 = vcmp.eq.s32.totalorder %v5915_v62, %v4472_v63  ;;  %v5917_v40 = vld [vmem:[#allocation32_spill] sm:$0xff]  ;;  %v5919_v42 = vld [vmem:[#allocation62_spill] sm:$0xff] }
 0x10d   : > { %3013 = vmatprep.subr.msk.bf16.mxu1 %vm2905_vm8, %v5852_v56  ;;  %vm2857_vm1 = vmpackc.low %vm388_vm5, %vm385_vm9  ;;  %vm475_vm9 = vcmp.eq.s32.totalorder %v5916_v39, %v4472_v63  ;;  %vm478_vm5 = vcmp.eq.s32.totalorder %v5917_v40, %v4472_v63  ;;  %v5918_v41 = vld [vmem:[#allocation60_spill] sm:$0xff]  ;;  %v5920_v10 = vld [vmem:[#allocation63_spill] sm:$0xff] }
 0x10e   : > { %2992 = vmatpush3.bf16.msk.msra.mxu0 %vm2857_vm1, %v5852_v56  ;;  %vm2889_vm3 = vmpackc.low %vm484_vm14, %vm481_vm0  ;;  %vm421_vm0 = vcmp.eq.s32.totalorder %v5918_v41, %v4472_v63  ;;  %vm424_vm14 = vcmp.eq.s32.totalorder %v5919_v42, %v4472_v63  ;;  %v5921_v9 = vld [vmem:[#allocation64_spill] sm:$0xff]  ;;  %v5922_v4 = vld [vmem:[#allocation33_spill] sm:$0xff] }
 0x10f   : > { %3014 = vmatpush3.bf16.msk.msra.mxu1 %vm2889_vm3, %v5852_v56  ;;  %vm2875_vm11 = vmpackc.low %vm430_vm10, %vm427_vm6  ;;  %vm517_vm6 = vcmp.eq.s32.totalorder %v5920_v10, %v4472_v63  ;;  %vm520_vm10 = vcmp.eq.s32.totalorder %v5921_v9, %v4472_v63  ;;  %v5923_v62 = vld [vmem:[#allocation34_spill] sm:$0xff]  ;;  %v5924_v39 = vld [vmem:[#allocation35_spill] sm:$0xff] }
 0x110   : > { %2993 = vmatprep.subr.msk.bf16.mxu0 %vm2875_vm11, %v5852_v56  ;;  %vm2907_vm8 = vmpackc.low %vm526_vm12, %vm523_vm4  ;;  %vm373_vm4 = vcmp.eq.s32.totalorder %v5922_v4, %v4472_v63  ;;  %vm376_vm12 = vcmp.eq.s32.totalorder %v5923_v62, %v4472_v63  ;;  %v5925_v40 = vld [vmem:[#allocation36_spill] sm:$0xff]  ;;  %v5926_v41 = vld [vmem:[#allocation65_spill] sm:$0xff] }
 0x111   : > { %3015 = vmatprep.subr.msk.bf16.mxu1 %vm2907_vm8, %v5852_v56  ;;  %vm2859_vm1 = vmpackc.low %vm382_vm13, %vm379_vm7  ;;  %vm469_vm7 = vcmp.eq.s32.totalorder %v5924_v39, %v4472_v63  ;;  %vm472_vm13 = vcmp.eq.s32.totalorder %v5925_v40, %v4472_v63  ;;  %v5927_v42 = vld [vmem:[#allocation66_spill] sm:$0xff]  ;;  %v5928_v10 = vld [vmem:[#allocation67_spill] sm:$0xff] }
 0x112   : > { %2994 = vmatpush3.bf16.msk.msra.mxu0 %vm2859_vm1, %v5852_v56  ;;  %vm2891_vm3 = vmpackc.low %vm478_vm5, %vm475_vm9  ;;  %vm415_vm9 = vcmp.eq.s32.totalorder %v5926_v41, %v4472_v63  ;;  %vm418_vm5 = vcmp.eq.s32.totalorder %v5927_v42, %v4472_v63  ;;  %v5929_v9 = vld [vmem:[#allocation68_spill] sm:$0xff]  ;;  %v5930_v4 = vld [vmem:[#allocation37_spill] sm:$0xff] }
 0x113   : > { %3016 = vmatpush3.bf16.msk.msra.mxu1 %vm2891_vm3, %v5852_v56  ;;  %vm2877_vm11 = vmpackc.low %vm424_vm14, %vm421_vm0  ;;  %vm511_vm0 = vcmp.eq.s32.totalorder %v5928_v10, %v4472_v63  ;;  %vm514_vm14 = vcmp.eq.s32.totalorder %v5929_v9, %v4472_v63  ;;  %v5931_v62 = vld [vmem:[#allocation38_spill] sm:$0xff]  ;;  %v5932_v39 = vld [vmem:[#allocation39_spill] sm:$0xff] }
 0x114   : > { %2995 = vmatprep.subr.msk.bf16.mxu0 %vm2877_vm11, %v5852_v56  ;;  %vm2909_vm8 = vmpackc.low %vm520_vm10, %vm517_vm6  ;;  %vm367_vm6 = vcmp.eq.s32.totalorder %v5930_v4, %v4472_v63  ;;  %vm370_vm10 = vcmp.eq.s32.totalorder %v5931_v62, %v4472_v63  ;;  %v5933_v40 = vld [vmem:[#allocation40_spill] sm:$0xff]  ;;  %v5934_v41 = vld [vmem:[#allocation71_spill] sm:$0xff] }
 0x115   : > { %3017 = vmatprep.subr.msk.bf16.mxu1 %vm2909_vm8, %v5852_v56  ;;  %vm2861_vm1 = vmpackc.low %vm376_vm12, %vm373_vm4  ;;  %vm463_vm4 = vcmp.eq.s32.totalorder %v5932_v39, %v4472_v63  ;;  %vm466_vm12 = vcmp.eq.s32.totalorder %v5933_v40, %v4472_v63  ;;  %v5935_v42 = vld [vmem:[#allocation72_spill] sm:$0xff]  ;;  %v5936_v10 = vld [vmem:[#allocation73_spill] sm:$0xff] }
 0x116   : > { %2996 = vmatpush3.bf16.msk.msra.mxu0 %vm2861_vm1, %v5852_v56  ;;  %vm2893_vm3 = vmpackc.low %vm472_vm13, %vm469_vm7  ;;  %vm409_vm7 = vcmp.eq.s32.totalorder %v5934_v41, %v4472_v63  ;;  %vm412_vm13 = vcmp.eq.s32.totalorder %v5935_v42, %v4472_v63  ;;  %v5937_v9 = vld [vmem:[#allocation74_spill] sm:$0xff]  ;;  %v5938_v4 = vld [vmem:[#allocation41_spill] sm:$0xff] }
 0x117   : > { %3018 = vmatpush3.bf16.msk.msra.mxu1 %vm2893_vm3, %v5852_v56  ;;  %vm2879_vm11 = vmpackc.low %vm418_vm5, %vm415_vm9  ;;  %vm505_vm9 = vcmp.eq.s32.totalorder %v5936_v10, %v4472_v63  ;;  %vm508_vm5 = vcmp.eq.s32.totalorder %v5937_v9, %v4472_v63  ;;  %v5939_v62 = vld [vmem:[#allocation42_spill] sm:$0xff]  ;;  %v5940_v39 = vld [vmem:[#allocation43_spill] sm:$0xff] }
 0x118   : > { %2997 = vmatprep.subr.msk.bf16.mxu0 %vm2879_vm11, %v5852_v56  ;;  %vm2911_vm8 = vmpackc.low %vm514_vm14, %vm511_vm0  ;;  %vm361_vm0 = vcmp.eq.s32.totalorder %v5938_v4, %v4472_v63  ;;  %vm364_vm14 = vcmp.eq.s32.totalorder %v5939_v62, %v4472_v63  ;;  %v5941_v40 = vld [vmem:[#allocation44_spill] sm:$0xff]  ;;  %v5942_v41 = vld [vmem:[#allocation75_spill] sm:$0xff] }
 0x119   : > { %3019 = vmatprep.subr.msk.bf16.mxu1 %vm2911_vm8, %v5852_v56  ;;  %vm2863_vm1 = vmpackc.low %vm370_vm10, %vm367_vm6  ;;  %vm457_vm6 = vcmp.eq.s32.totalorder %v5940_v39, %v4472_v63  ;;  %vm460_vm10 = vcmp.eq.s32.totalorder %v5941_v40, %v4472_v63  ;;  %v5943_v42 = vld [vmem:[#allocation76_spill] sm:$0xff]  ;;  %v5944_v10 = vld [vmem:[#allocation77_spill] sm:$0xff] }
 0x11a   : > { %2998 = vmatpush3.bf16.msk.msra.mxu0 %vm2863_vm1, %v5852_v56  ;;  %vm2895_vm3 = vmpackc.low %vm466_vm12, %vm463_vm4  ;;  %vm403_vm4 = vcmp.eq.s32.totalorder %v5942_v41, %v4472_v63  ;;  %vm406_vm12 = vcmp.eq.s32.totalorder %v5943_v42, %v4472_v63  ;;  %v5945_v9 = vld [vmem:[#allocation78_spill] sm:$0xff]  ;;  %v5946_v4 = vld [vmem:[#allocation45_spill] sm:$0xff] }
 0x11b   : > { %3020 = vmatpush3.bf16.msk.msra.mxu1 %vm2895_vm3, %v5852_v56  ;;  %vm2881_vm11 = vmpackc.low %vm412_vm13, %vm409_vm7  ;;  %vm499_vm7 = vcmp.eq.s32.totalorder %v5944_v10, %v4472_v63  ;;  %vm502_vm13 = vcmp.eq.s32.totalorder %v5945_v9, %v4472_v63  ;;  %v5947_v62 = vld [vmem:[#allocation46_spill] sm:$0xff]  ;;  %v5948_v39 = vld [vmem:[#allocation47_spill] sm:$0xff] }
 0x11c   : > { %2999 = vmatprep.subr.msk.bf16.mxu0 %vm2881_vm11, %v5852_v56  ;;  %vm2913_vm8 = vmpackc.low %vm508_vm5, %vm505_vm9  ;;  %vm355_vm9 = vcmp.eq.s32.totalorder %v3529_v1, %v4472_v63  ;;  %vm358_vm5 = vcmp.eq.s32.totalorder %v5946_v4, %v4472_v63  ;;  %v5949_v1 = vld [vmem:[#allocation79_spill] sm:$0xff]  ;;  %v5950_v40 = vld [vmem:[#allocation80_spill] sm:$0xff] }
 0x11d   : > { %3021 = vmatprep.subr.msk.bf16.mxu1 %vm2913_vm8, %v5852_v56  ;;  %vm2865_vm1 = vmpackc.low %vm364_vm14, %vm361_vm0  ;;  %vm451_vm0 = vcmp.eq.s32.totalorder %v5947_v62, %v4472_v63  ;;  %vm454_vm14 = vcmp.eq.s32.totalorder %v5948_v39, %v4472_v63  ;;  %v5953_v41 = vld [vmem:[#allocation81_spill] sm:$0xff]  ;;  %v5954_v42 = vld [vmem:[#allocation82_spill] sm:$0xff] }
 0x11e   : > { %3000 = vmatpush3.bf16.msk.msra.mxu0 %vm2865_vm1, %v5852_v56  ;;  %vm2897_vm3 = vmpackc.low %vm460_vm10, %vm457_vm6  ;;  %vm589_vm1 = vcmp.eq.s32.totalorder %v5949_v1, %v4472_v63  ;;  %v5959_v10 = vld [vmem:[#allocation84_spill] sm:$0xff]  ;;  %v5960_v9 = vld [vmem:[#allocation85_spill] sm:$0xff] }
 0x11f   : > { %3022 = vmatpush3.bf16.msk.msra.mxu1 %vm2897_vm3, %v5852_v56  ;;  %vm2883_vm11 = vmpackc.low %vm406_vm12, %vm403_vm4  ;;  %vm592_vm4 = vcmp.eq.s32.totalorder %v5950_v40, %v4472_v63  ;;  %vm5951_vm12 = vcmp.eq.s32.totalorder %v4550_v59, %v4472_v63  ;;  %vm685_vm3 = vcmp.eq.s32.totalorder %v5953_v41, %v4472_v63  ;;  %v5957_v59 = vld [vmem:[#allocation83_spill] sm:$0xff]  ;;  %v5965_v4 = vld [vmem:[#allocation96_spill] sm:$0xff] }
 0x120   : > { %3001 = vmatprep.subr.msk.bf16.mxu0 %vm2883_vm11, %v5852_v56  ;;  %vm2915_vm8 = vmpackc.low %vm502_vm13, %vm499_vm7  ;;  %vm5952_vm7 = vcmp.eq.s32.totalorder %v4562_v23, %v4472_v63  ;;  %vm5956_vm11 = vcmp.eq.s32.totalorder %v4568_v21, %v4472_v63  ;;  %v5958_v23 = vld [vmem:[#allocation88_spill] sm:$0xff]  ;;  %v5963_v21 = vld [vmem:[#allocation86_spill] sm:$0xff] }
 0x121   : > { %3023 = vmatprep.subr.msk.bf16.mxu1 %vm2915_vm8, %v5852_v56  ;;  %vm2867_vm6 = vmpackc.low %vm358_vm5, %vm355_vm9  ;;  %vm688_vm9 = vcmp.eq.s32.totalorder %v5954_v42, %v4472_v63  ;;  %vm5955_vm5 = vcmp.eq.s32.totalorder %v4565_v22, %v4472_v63  ;;  %v5964_v22 = vld [vmem:[#allocation87_spill] sm:$0xff]  ;;  %v5970_v62 = vld [vmem:[#allocation94_spill] sm:$0xff] }
 0x122   : > { %3002 = vmatpush3.bf16.msk.msra.mxu0 %vm2867_vm6, %v5852_v56  ;;  %vm2899_vm10 = vmpackc.low %vm454_vm14, %vm451_vm0  ;;  %vm583_vm6 = vcmp.eq.s32.totalorder %v5959_v10, %v4472_v63  ;;  %v6019_v39 = vld [vmem:[#allocation61_spill] sm:$0xff] }
 0x123   : > { %3024 = vmatpush3.bf16.msk.msra.mxu1 %vm2899_vm10, %v5852_v56  ;;  %vm2933_vm13 = vmpackc.low %vm5952_vm7, %vm5951_vm12  ;;  %vm586_vm10 = vcmp.eq.s32.totalorder %v5960_v9, %v4472_v63  ;;  %vm5961_vm12 = vcmp.eq.s32.totalorder %v4597_v20, %v4472_v63  ;;  %vm5962_vm7 = vcmp.eq.s32.totalorder %v4600_v57, %v4472_v63  ;;  %v5968_v20 = vld [vmem:[#allocation97_spill] sm:$0xff] }
 0x124   : > { %3031 = vmatprep.subr.msk.bf16.mxu0 %vm2933_vm13, %v5852_v56  ;;  %vm2965_vm0 = vmpackc.low %vm5956_vm11, %vm5955_vm5  ;;  %vm682_vm13 = vcmp.eq.s32.totalorder %v5964_v22, %v4472_v63  ;;  %v5969_v57 = vld [vmem:[#allocation89_spill] sm:$0xff] }
 0x125   : > { %1948 = vmatmul.mubr.bf16.vlgmr.msra.gmra.mxu0 %v5957_v59  ;;  %3053 = vmatprep.subr.msk.bf16.mxu1 %vm2965_vm0, %v5852_v56  ;;  %vm2917_vm14 = vmpackc.low %vm592_vm4, %vm589_vm1  ;;  %vm679_vm4 = vcmp.eq.s32.totalorder %v5963_v21, %v4472_v63 }
 0x126   : > { %1988 = vmatmul.mubr.bf16.vlgmr.msra.gmra.mxu1 %v5958_v23  ;;  %3032 = vmatpush3.bf16.msk.msra.mxu0 %vm2917_vm14, %v5852_v56  ;;  %vm2949_vm8 = vmpackc.low %vm688_vm9, %vm685_vm3  ;;  %vm5966_vm3 = vcmp.eq.s32.totalorder %v4618_v55, %v4472_v63  ;;  %vm5967_vm9 = vcmp.eq.s32.totalorder %v4645_v53, %v4472_v63  ;;  %vm577_vm14 = vcmp.eq.s32.totalorder %v5969_v57, %v4472_v63 }
 0x127   : > { %3054 = vmatpush3.bf16.msk.msra.mxu1 %vm2949_vm8, %v5852_v56  ;;  %vm2935_vm1 = vmpackc.low %vm5962_vm7, %vm5961_vm12  ;;  %2027 = vmatprep.mubr.bf16.mxu0 %v5965_v4  ;;  %vm5971_vm8 = vcmp.eq.s32.totalorder %v5970_v62, %v4472_v63  ;;  %vm5972_vm12 = vcmp.eq.s32.totalorder %v4676_v17, %v4472_v63 }
 0x128   : > { %3033 = vmatprep.subr.msk.bf16.mxu0 %vm2935_vm1, %v5852_v56  ;;  %vm2967_vm5 = vmpackc.low %vm5967_vm9, %vm5966_vm3  ;;  %2067 = vmatprep.mubr.bf16.mxu1 %v5968_v20  ;;  %vm5976_vm3 = vcmp.eq.s32.totalorder %v4305_v37, %v4472_v63  ;;  %vm5977_vm9 = vcmp.eq.s32.totalorder %v4308_v30, %v4472_v63 }
 0x129   : > { %3055 = vmatprep.subr.msk.bf16.mxu1 %vm2967_vm5, %v5852_v56  ;;  %vm2919_vm11 = vmpackc.low %vm586_vm10, %vm583_vm6  ;;  %vm5973_vm6 = vcmp.eq.s32.totalorder %v4695_v51, %v4472_v63  ;;  %vm5974_vm10 = vcmp.eq.s32.totalorder %v4698_v18, %v4472_v63 }
 0x12a   : > { %3034 = vmatpush3.bf16.msk.msra.mxu0 %vm2919_vm11, %v5852_v56  ;;  %vm2951_vm0 = vmpackc.low %vm682_vm13, %vm679_vm4  ;;  %vm5975_vm4 = vcmp.eq.s32.totalorder %v4296_v36, %v4472_v63  ;;  %vm5978_vm11 = vcmp.eq.s32.totalorder %v4727_v16, %v4472_v63 }
 0x12b   : > { %3056 = vmatpush3.bf16.msk.msra.mxu1 %vm2951_vm0, %v5852_v56  ;;  %vm2937_vm7 = vmpackc.low %vm5972_vm12, %vm5971_vm8  ;;  %vm5979_vm0 = vcmp.eq.s32.totalorder %v4730_v50, %v4472_v63  ;;  %vm5981_vm12 = vcmp.eq.s32.totalorder %v4745_v38, %v4472_v63 }
 0x12c   : > { %3035 = vmatprep.subr.msk.bf16.mxu0 %vm2937_vm7, %v5852_v56  ;;  %vm2969_vm1 = vmpackc.low %vm5974_vm10, %vm5973_vm6  ;;  %vm5982_vm6 = vcmp.eq.s32.totalorder %v4339_v32, %v4472_v63  ;;  %vm5983_vm10 = vcmp.eq.s32.totalorder %v4342_v33, %v4472_v63 }
 0x12d   : > { %3057 = vmatprep.subr.msk.bf16.mxu1 %vm2969_vm1, %v5852_v56  ;;  %vm2921_vm13 = vmpackc.low %vm5975_vm4, %vm577_vm14  ;;  %vm5980_vm14 = vcmp.eq.s32.totalorder %v4742_v49, %v4472_v63  ;;  %vm5984_vm4 = vcmp.eq.s32.totalorder %v4350_v28, %v4472_v63 }
 0x12e   : > { %3036 = vmatpush3.bf16.msk.msra.mxu0 %vm2921_vm13, %v5852_v56  ;;  %vm2953_vm5 = vmpackc.low %vm5977_vm9, %vm5976_vm3  ;;  %vm5985_vm13 = vcmp.eq.s32.totalorder %v4353_v2, %v4472_v63  ;;  %vm5986_vm9 = vcmp.eq.s32.totalorder %v4777_v47, %v4472_v63 }
 0x12f   : > { %3058 = vmatpush3.bf16.msk.msra.mxu1 %vm2953_vm5, %v5852_v56  ;;  %vm2939_vm8 = vmpackc.low %vm5979_vm0, %vm5978_vm11  ;;  %vm5987_vm5 = vcmp.eq.s32.totalorder %v4780_v60, %v4472_v63  ;;  %vm5988_vm0 = vcmp.eq.s32.totalorder %v4797_v14, %v4472_v63 }
 0x130   : > { %3037 = vmatprep.subr.msk.bf16.mxu0 %vm2939_vm8, %v5852_v56  ;;  %vm2971_vm7 = vmpackc.low %vm5981_vm12, %vm5980_vm14  ;;  %vm5989_vm8 = vcmp.eq.s32.totalorder %v4813_v13, %v4472_v63  ;;  %vm5990_vm12 = vcmp.eq.s32.totalorder %v4377_v0, %v4472_v63 }
 0x131   : > { %3059 = vmatprep.subr.msk.bf16.mxu1 %vm2971_vm7, %v5852_v56  ;;  %vm2923_vm1 = vmpackc.low %vm5983_vm10, %vm5982_vm6  ;;  %vm5991_vm7 = vcmp.eq.s32.totalorder %v4380_v48, %v4472_v63  ;;  %vm5992_vm10 = vcmp.eq.s32.totalorder %v4391_v29, %v4472_v63 }
 0x132   : > { %3038 = vmatpush3.bf16.msk.msra.mxu0 %vm2923_vm1, %v5852_v56  ;;  %vm2955_vm3 = vmpackc.low %vm5985_vm13, %vm5984_vm4  ;;  %vm5993_vm4 = vcmp.eq.s32.totalorder %v4827_v12, %v4472_v63  ;;  %vm5994_vm13 = vcmp.eq.s32.totalorder %v4830_v11, %v4472_v63  ;;  %v6015_v11 = vld [vmem:[#allocation91_spill] sm:$0xff] }
 0x133   : > { %3060 = vmatpush3.bf16.msk.msra.mxu1 %vm2955_vm3, %v5852_v56  ;;  %vm2941_vm11 = vmpackc.low %vm5987_vm5, %vm5986_vm9  ;;  %vm5995_vm9 = vcmp.eq.s32.totalorder %v4847_v45, %v4472_v63 }
 0x134   : > { %3039 = vmatprep.subr.msk.bf16.mxu0 %vm2941_vm11, %v5852_v56  ;;  %vm2973_vm14 = vmpackc.low %vm5989_vm8, %vm5988_vm0  ;;  %vm5997_vm11 = vcmp.eq.s32.totalorder %v4422_v58, %v4472_v63  ;;  %vm5998_vm8 = vcmp.eq.s32.totalorder %v4430_v54, %v4472_v63 }
 0x135   : > { %3061 = vmatprep.subr.msk.bf16.mxu1 %vm2973_vm14, %v5852_v56  ;;  %vm2925_vm6 = vmpackc.low %vm5991_vm7, %vm5990_vm12  ;;  %vm5999_vm14 = vcmp.eq.s32.totalorder %v4433_v3, %v4472_v63  ;;  %vm6001_vm7 = vcmp.eq.s32.totalorder %v4877_v43, %v4472_v63 }
 0x136   : > { %3040 = vmatpush3.bf16.msk.msra.mxu0 %vm2925_vm6, %v5852_v56  ;;  %vm2957_vm1 = vmpackc.low %vm5992_vm10, %vm661_vm2  ;;  %vm5996_vm2 = vcmp.eq.s32.totalorder %v4410_v34, %v4472_v63  ;;  %vm6002_vm10 = vcmp.eq.s32.totalorder %v4880_v7, %v4472_v63  ;;  %v6013_v7 = vld [vmem:[#allocation90_spill] sm:$0xff] }
 0x137   : > { %3062 = vmatpush3.bf16.msk.msra.mxu1 %vm2957_vm1, %v5852_v56  ;;  %vm2943_vm3 = vmpackc.low %vm5994_vm13, %vm5993_vm4  ;;  %vm6003_vm1 = vcmp.eq.s32.totalorder %v4896_v6, %v4472_v63  ;;  %vm6004_vm13 = vcmp.eq.s32.totalorder %v4454_v27, %v4472_v63  ;;  %v6009_v6 = vld [vmem:[#allocation98_spill] sm:$0xff] }
 0x138   : > { %3041 = vmatprep.subr.msk.bf16.mxu0 %vm2943_vm3, %v5852_v56  ;;  %vm2975_vm5 = vmpackc.low %vm5995_vm9, %vm703_vm15  ;;  %vm6000_vm15 = vcmp.eq.s32.totalorder %v4863_v44, %v4472_v63  ;;  %vm6005_vm3 = vcmp.eq.s32.totalorder %v4463_v26, %v4472_v63 }
 0x139   : > { %3063 = vmatprep.subr.msk.bf16.mxu1 %vm2975_vm5, %v5852_v56  ;;  %vm2927_vm0 = vmpackc.low %vm5997_vm11, %vm5996_vm2  ;;  %vm6006_vm5 = vcmp.eq.s32.totalorder %v4466_v25, %v4472_v63  ;;  %vm6007_vm2 = vcmp.eq.s32.totalorder %v4469_v24, %v4472_v63 }
 0x13a   : > { %3042 = vmatpush3.bf16.msk.msra.mxu0 %vm2927_vm0, %v5852_v56  ;;  %vm2959_vm12 = vmpackc.low %vm5999_vm14, %vm5998_vm8  ;;  %vm6008_vm0 = vcmp.eq.s32.totalorder %v4927_v61, %v4472_v63  ;;  %vm6010_vm8 = vcmp.eq.s32.totalorder %v6009_v6, %v4472_v63 }
 0x13b   : > { %3064 = vmatpush3.bf16.msk.msra.mxu1 %vm2959_vm12, %v5852_v56  ;;  %vm2945_vm6 = vmpackc.low %vm6001_vm7, %vm6000_vm15  ;;  %vm6011_vm12 = vcmp.eq.s32.totalorder %v4944_v5, %v4472_v63  ;;  %vm6012_vm15 = vcmp.eq.s32.totalorder %v4958_v52, %v4472_v63 }
 0x13c   : > { %3043 = vmatprep.subr.msk.bf16.mxu0 %vm2945_vm6, %v5852_v56  ;;  %vm2977_vm4 = vmpackc.low %vm6003_vm1, %vm6002_vm10  ;;  %vm6014_vm6 = vcmp.eq.s32.totalorder %v6013_v7, %v4472_v63  ;;  %vm6016_vm10 = vcmp.eq.s32.totalorder %v6015_v11, %v4472_v63 }
 0x13d   : > { %3065 = vmatprep.subr.msk.bf16.mxu1 %vm2977_vm4, %v5852_v56  ;;  %vm2929_vm9 = vmpackc.low %vm6005_vm3, %vm6004_vm13  ;;  %vm6017_vm4 = vcmp.eq.s32.totalorder %v5886_v8, %v4472_v63  ;;  %vm6018_vm13 = vcmp.eq.s32.totalorder %v5887_v31, %v4472_v63 }
 0x13e   : > { %3044 = vmatpush3.bf16.msk.msra.mxu0 %vm2929_vm9, %v5852_v56  ;;  %vm2961_vm11 = vmpackc.low %vm6007_vm2, %vm6006_vm5 }
 0x13f   : > { %3066 = vmatpush3.bf16.msk.msra.mxu1 %vm2961_vm11, %v5852_v56  ;;  %vm2947_vm14 = vmpackc.low %vm6010_vm8, %vm6008_vm0 }
 0x140   : > { %3045 = vmatprep.subr.msk.bf16.mxu0 %vm2947_vm14, %v5852_v56  ;;  %vm2979_vm7 = vmpackc.low %vm6012_vm15, %vm6011_vm12 }
 0x141   : > { %3067 = vmatprep.subr.msk.bf16.mxu1 %vm2979_vm7, %v5852_v56  ;;  %vm2931_vm1 = vmpackc.low %vm6016_vm10, %vm6014_vm6 }
 0x142   : > { %3046 = vmatpush3.bf16.msk.msra.mxu0 %vm2931_vm1, %v5852_v56  ;;  %vm2963_vm3 = vmpackc.low %vm6018_vm13, %vm6017_vm4 }
 0x143   : > { %3068 = vmatpush3.bf16.msk.msra.mxu1 %vm2963_vm3, %v5852_v56 }
 0x145   : > { %2028 = vmatmul.mubr.bf16.vlgmr.msra.gmra.mxu0 %v5039_v15 }
 0x146   : > { %2068 = vmatmul.mubr.bf16.vlgmr.msra.gmra.mxu1 %v5216_v19 }
 0x185   : > { %v1785_v5 = vpop.f32.mrf.mxu0 }
 0x186   : > { %v1826_v12 = vpop.f32.mrf.mxu1 }
 0x187   : > { %v1827_v13 = vadd.f32 %v1826_v12, %v1785_v5  ;;  %v1787_v14 = vpop.f32.mrf.mxu0 }
 0x188   : > { %v1828_v17 = vpop.f32.mrf.mxu1 }
 0x189   : > { %v1829_v24 = vadd.f32 %v1828_v17, %v1787_v14  ;;  %v1789_v25 = vpop.f32.mrf.mxu0 }
 0x18a   : > { %v1830_v26 = vpop.f32.mrf.mxu1 }
 0x18b   : > { %v1790_v27 = vpop.f32.mrf.mxu0 }
 0x18c   : > { %v1831_v28 = vpop.f32.mrf.mxu1 }
 0x1c5   : > { %v1867_v29 = vpop.f32.mrf.mxu0 }
 0x1c6   : > { %v1868_v30 = vadd.f32 %v1867_v29, %v1827_v13  ;;  %v1908_v32 = vpop.f32.mrf.mxu1 }
 0x1c7   : > { %v1869_v33 = vpop.f32.mrf.mxu0 }
 0x1c8   : > { %v1909_v34 = vadd.f32 %v1908_v32, %v1868_v30  ;;  %v1870_v35 = vadd.f32 %v1869_v33, %v1829_v24  ;;  %v1910_v36 = vpop.f32.mrf.mxu1 }
 0x1c9   : > { %v1871_v38 = vpop.f32.mrf.mxu0 }
 0x1ca   : > { %v1911_v43 = vadd.f32 %v1910_v36, %v1870_v35  ;;  %v1912_v44 = vpop.f32.mrf.mxu1 }
 0x1cb   : > { %v1872_v45 = vpop.f32.mrf.mxu0 }
 0x1cc   : > { %v2078_v46 = vcombine.low %v1909_v34, %v1911_v43  ;;  %v1913_v49 = vpop.f32.mrf.mxu1 }
 0x1ce   : > { %v2085_v1 = vrot.slane %v2078_v46, %v6019_v39 }
 0x1e5   : > { %v3003_v50 = vpop.f32.mrf.mxu0 }
 0x1e6   : > { %v3025_v51 = vpop.f32.mrf.mxu1 }
 0x1e7   : > { %v3004_v52 = vpop.f32.mrf.mxu0 }
 0x1e8   : > { %v3026_v53 = vpop.f32.mrf.mxu1  ;;  %v3005_v63 = vadd.f32 %v3004_v52, %v3003_v50 }
 0x1e9   : > { %v3006_v55 = vpop.f32.mrf.mxu0  ;;  %v3027_v3 = vadd.f32 %v3026_v53, %v3025_v51 }
 0x1ea   : > { %v3028_v56 = vpop.f32.mrf.mxu1 }
 0x1eb   : > { %v3007_v60 = vpop.f32.mrf.mxu0  ;;  %v1990_v37 = vadd.f32 %v3027_v3, %v3005_v63 }
 0x1ec   : > { %v3029_v61 = vpop.f32.mrf.mxu1 }
 0x205   : > { %v3047_v54 = vpop.f32.mrf.mxu0 }
 0x206   : > { %v3069_v58 = vpop.f32.mrf.mxu1 }
 0x207   : > { %v3048_v2 = vpop.f32.mrf.mxu0 }
 0x208   : > { %v3049_v0 = vadd.f32 %v3048_v2, %v3047_v54  ;;  %v3070_v48 = vpop.f32.mrf.mxu1 }
 0x209   : > { %v3050_v8 = vpop.f32.mrf.mxu0  ;;  %v3071_v15 = vadd.f32 %v3070_v48, %v3069_v58 }
 0x20a   : > { %v2030_v31 = vadd.f32 %v3049_v0, %v1990_v37  ;;  %v3072_v18 = vpop.f32.mrf.mxu1 }
 0x20b   : > { %v3051_v16 = vpop.f32.mrf.mxu0 }
 0x20c   : > { %v2070_v47 = vadd.f32 %v3071_v15, %v2030_v31  ;;  %v3073_v19 = vpop.f32.mrf.mxu1 }
 0x20e   : > { %v2092_v40 = vrot.slane %v2070_v47, %v6019_v39 }
 0x210   : > { %v2093_v41 = vcombine.low %v2085_v1, %v2092_v40 }
 0x212   : > { %2095 = vst [vmem:[%s205_s12] sm:$0x3f] %v2093_v41 }
 0x213   : > { %3239 = shalt.err (!%p3236_p0)
}
 0x214   : > { %s3240_s28 = scalar_lea.hbm %s2109_s6, 96  ;;  %s3244_s14 = scalar_lea.hbm %s5662_s3, 576 }
 0x215   : > { %p3241_p3 = scmp.ne.s32.totalorder %s2109_s6, %s3240_s28  ;;  %p3245_p10 = scmp.lt.s32.totalorder %s2109_s6, %s5662_s3 }
 0x216   : > { %p3246_p4 = scmp.lt.s32.totalorder %s3244_s14, %s3240_s28 }
 0x217   : > { %p3242_p2 = pnand %p3241_p3, %p6020_p8 }
 0x218   : > { %p3247_p6 = por %p3246_p4, %p3245_p10 }
 0x219   : > { %p3243_p9 = pneg %p3242_p2 }
 0x21b   : > { %p3248_p13 = pnand %p3247_p6, %p3243_p9 }
 0x21d   : > { %3251 = shalt.err (!%p3248_p13)
}
 0x21e   : > { %3084 = dma.vmem_to_hbm [thread:$0]  (%p6020_p8), %s2112_s10, 96, %s2109_s6, %s2097_s24  }
 0x21f PF: > { %p3100_p11 = scmp.ge.s32.totalorder %s3320_s20, 2  ;;  %s2123_s7 = sand.u32 1, %s3308_s18  }
 0x220   : > { %p6021_p1 = scmp.ne.s32.totalorder %s5761_s30, 0  ;;  %s2124_s9 = scalar_lea.sflag [#allocation6], %s2123_s7 }
 0x222   : > { %p3096_p12 = pnand %p3100_p11, %p6021_p1 }
 0x224   : > { %p3097_p5 = pneg %p3096_p12 }
 0x226   : > { %3291 = dma.done.wait (%p3097_p5), %s2124_s9, 96  }
 0x227   : > { %3293 = vsyncadd (%p3097_p5), %s2124_s9, 4294967200  ;;  %s6022_s27 = smov %s3484_s15  ;;  %s6023_s22 = sld [smem:[#allocation16_spill]] }
 0x228   : > { %s6024_s0 = sld [smem:[#allocation17_spill]]  ;;  %p23_p8 = scmp.ge.s32.totalorder %s3391_s23, 8  }
 0x229   : > { %s6025_s15 = smov %s3300_s16  ;;  %s6026_s16 = smov %s3304_s17 }
 0x22a   : > { %s6027_s17 = smov %s6022_s27  ;;  %s6028_s18 = smov %s3312_s19 }
 0x22b   : > { %s6030_s20 = smov %s3391_s23  ;;  %25 = sbr.rel (!%p23_p8) target bundleno = 15 (0xf), region = 86 }
 0x22d   : > { %s6029_s19 = smov %s6023_s22 }
 0x230   :  { %2129 = vsyncpa [#allocation5], 1 }
 0x231   :  { %2131 = vsyncpa [#allocation5 + $0x1], 1 }
 0x232   :  { %2132 = vsyncpa [#allocation8], 1 }
 0x233   :  { %2134 = vsyncpa [#allocation8 + $0x1], 1 }
 0x234   :  { %2135 = vsyncpa [#allocation6], 1 }
 0x235   :  { %2137 = vsyncpa [#allocation6 + $0x1], 1 }

</bundles_post_ra>
